<compile_context>
chip_gen: v5e
topology: v5e:2x2
jax: 0.10.0
libtpu: 0.0.40
codegen_flags: <defaults>
</compile_context>

<pallas_src>
import numpy as np
import jax
import jax.numpy as jnp
from jax.experimental import pallas as pl
from jax.experimental.pallas import tpu as pltpu

# ---- problem sizes (small, consistent with the module) ----------------------
B, S, D = 2, 8, 32          # batch, seq, dim
H, DH = 4, 8                # num_attention_heads, attention_head_dim (H*DH == D)
S_ENC, D_CROSS = 12, 64     # encoder_hidden_states: [B, S_ENC, D_CROSS]
D_FF = 4 * D                # diffusers FeedForward default mult=4
EPS = 1e-5
SCALE = DH ** -0.5

# row indices inside the packed `vecs` array ([10, 2*D_FF] f32)
G1, B1, BO1, G2, B2, BO2, G3, B3, BF, BG = range(10)


# =============================================================================
# Pallas kernel: one batch element per grid step, whole block fused.
# =============================================================================
def transformer_block_kernel(hid_ref, enc_ref,
                             wqkv1_ref, wq2_ref, wkv2_ref, wo12_ref,
                             wg_ref, wf_ref, vecs_ref,
                             out_ref):
    f32 = jnp.float32
    bf16 = jnp.bfloat16

    x = hid_ref[0]                      # [S, D] f32
    enc = enc_ref[0]                    # [S_ENC, D_CROSS] f32

    def vec(i, width=D):
        # packed [1, width] f32 row (LN gamma/beta or bias)
        return vecs_ref[i:i + 1, 0:width]

    def layer_norm(v, g, b):
        mu = jnp.mean(v, axis=-1, keepdims=True)
        var = jnp.mean(jnp.square(v - mu), axis=-1, keepdims=True)
        return (v - mu) * jax.lax.rsqrt(var + EPS) * g + b

    def project(v, w_h):
        # v: [Sx, Din] f32 ; w_h: [G, Din, N] bf16  ->  [G, Sx, N] f32
        vb = jnp.broadcast_to(v.astype(bf16), (w_h.shape[0],) + v.shape)
        return jax.lax.dot_general(vb, w_h, (((2,), (1,)), ((0,), (0,))),
                                   preferred_element_type=f32)

    def attend(q_h, k_h, v_h, wo_h, bo):
        # q_h [H,Sq,DH], k_h/v_h [H,Sk,DH] (f32, scale pre-folded into Q weights);
        # wo_h [H,DH,D] bf16; bo [1,D]
        s = jax.lax.dot_general(q_h.astype(bf16), k_h.astype(bf16),
                                (((2,), (2,)), ((0,), (0,))),
                                preferred_element_type=f32)              # [H,Sq,Sk]
        s = s - jnp.max(s, axis=-1, keepdims=True)
        p = jnp.exp(s)
        p = p * pl.reciprocal(jnp.sum(p, axis=-1, keepdims=True), approx=True)
        o_h = jax.lax.dot_general(p.astype(bf16), v_h.astype(bf16),
                                  (((2,), (1,)), ((0,), (0,))),
                                  preferred_element_type=f32)            # [H,Sq,DH]
        o_h = jax.lax.dot_general(o_h.astype(bf16), wo_h,
                                  (((2,), (1,)), ((0,), (0,))),
                                  preferred_element_type=f32)            # [H,Sq,D]
        return jnp.sum(o_h, axis=0) + bo                                 # [Sq,D]

    # 1) self-attention: attn1(norm1(x)) + x
    nx = layer_norm(x, vec(G1), vec(B1))
    qkv = project(nx, wqkv1_ref[...])                                    # [3H,S,DH]
    x = attend(qkv[0:H], qkv[H:2 * H], qkv[2 * H:3 * H],
               wo12_ref[0:H], vec(BO1)) + x

    # 2) cross-attention: attn2(norm2(x), encoder_hidden_states) + x
    nx = layer_norm(x, vec(G2), vec(B2))
    q2 = project(nx, wq2_ref[...])                                       # [H,S,DH]
    kv2 = project(enc, wkv2_ref[...])                                    # [2H,S_ENC,DH]
    x = attend(q2, kv2[0:H], kv2[H:2 * H],
               wo12_ref[H:2 * H], vec(BO2)) + x

    # 3) GEGLU feed-forward: ff(norm3(x)) + x
    nx = layer_norm(x, vec(G3), vec(B3))
    proj = jnp.dot(nx.astype(bf16), wg_ref[...],
                   preferred_element_type=f32) + vec(BG, 2 * D_FF)       # [S,2*D_FF]
    ff = proj[:, 0:D_FF] * jax.nn.gelu(proj[:, D_FF:2 * D_FF], approximate=True)
    x = jnp.dot(ff.astype(bf16), wf_ref[...],
                preferred_element_type=f32) + vec(BF) + x

    out_ref[0] = x
    # TODO(synk): dropout (p=0.0) and the ada_norm / ada_norm_zero branches are not
    # exercised by this configuration and are intentionally omitted.


@jax.jit
def run_block(hidden, enc, wqkv1_h, wq2_h, wkv2_h, wo12_h, wg_t, wf_t, vecs):
    weights = (wqkv1_h, wq2_h, wkv2_h, wo12_h, wg_t, wf_t, vecs)
    w_specs = [pl.BlockSpec(w.shape, (lambda b, _n=w.ndim: (0,) * _n))
               for w in weights]

    in_specs = [
        pl.BlockSpec((1, S, D), lambda b: (b, 0, 0)),
        pl.BlockSpec((1, S_ENC, D_CROSS), lambda b: (b, 0, 0)),
    ] + w_specs

    return pl.pallas_call(
        transformer_block_kernel,
        out_shape=jax.ShapeDtypeStruct((B, S, D), jnp.float32),
        grid=(B,),
        in_specs=in_specs,
        out_specs=pl.BlockSpec((1, S, D), lambda b: (b, 0, 0)),
        compiler_params=pltpu.CompilerParams(
            dimension_semantics=("parallel",)),
    )(hidden, enc, *weights)


# =============================================================================
# Pure-JAX reference (PyTorch-layout weights, exact erf GELU, f32 throughout)
# =============================================================================
def _layer_norm(x, gamma, beta):
    mean = jnp.mean(x, axis=-1, keepdims=True)
    var = jnp.mean(jnp.square(x - mean), axis=-1, keepdims=True)
    return (x - mean) * jax.lax.rsqrt(var + EPS) * gamma + beta


def _linear(x, w, b=None):
    # PyTorch nn.Linear: y = x @ w.T (+ b), w of shape [out, in]
    y = jax.lax.dot_general(x, w, (((1,), (1,)), ((), ())),
                            preferred_element_type=jnp.float32)
    if b is not None:
        y = y + b
    return y


def _gelu(x):
    return 0.5 * x * (1.0 + jax.lax.erf(x * 0.7071067811865476))


def _mha(q_in, kv_in, wq, wk, wv, wo, bo):
    q = _linear(q_in, wq)
    k = _linear(kv_in, wk)
    v = _linear(kv_in, wv)
    outs = []
    for h in range(H):
        qh = q[:, h * DH:(h + 1) * DH]
        kh = k[:, h * DH:(h + 1) * DH]
        vh = v[:, h * DH:(h + 1) * DH]
        s = jax.lax.dot_general(qh, kh, (((1,), (1,)), ((), ())),
                                preferred_element_type=jnp.float32) * SCALE
        s = s - jnp.max(s, axis=-1, keepdims=True)
        p = jnp.exp(s)
        p = p / jnp.sum(p, axis=-1, keepdims=True)
        outs.append(jnp.dot(p, vh, preferred_element_type=jnp.float32))
    o = jnp.concatenate(outs, axis=-1)
    return _linear(o, wo, bo)


def reference(hidden, enc, P):
    def one(h, e):
        nh = _layer_norm(h, P["g1"][0], P["b1"][0])
        h = _mha(nh, nh, P["wq1"], P["wk1"], P["wv1"], P["wo1"], P["bo1"][0]) + h
        nh = _layer_norm(h, P["g2"][0], P["b2"][0])
        h = _mha(nh, e, P["wq2"], P["wk2"], P["wv2"], P["wo2"], P["bo2"][0]) + h
        nh = _layer_norm(h, P["g3"][0], P["b3"][0])
        proj = _linear(nh, P["wg"], P["bg"][0])
        ff = proj[:, :D_FF] * _gelu(proj[:, D_FF:])
        return _linear(ff, P["wf"], P["bf"][0]) + h
    return jax.vmap(one)(hidden, enc)


# =============================================================================
# Parameter construction (PyTorch layout) and kernel-side packing
# =============================================================================
def make_params(key):
    ks = iter(jax.random.split(key, 16))
    w = lambda shape: (0.02 * jax.random.normal(next(ks), shape)).astype(jnp.float32)
    return {
        "g1": jnp.ones((1, D), jnp.float32), "b1": jnp.zeros((1, D), jnp.float32),
        "wq1": w((H * DH, D)), "wk1": w((H * DH, D)), "wv1": w((H * DH, D)),
        "wo1": w((D, H * DH)), "bo1": jnp.zeros((1, D), jnp.float32),
        "g2": jnp.ones((1, D), jnp.float32), "b2": jnp.zeros((1, D), jnp.float32),
        "wq2": w((H * DH, D)), "wk2": w((H * DH, D_CROSS)), "wv2": w((H * DH, D_CROSS)),
        "wo2": w((D, H * DH)), "bo2": jnp.zeros((1, D), jnp.float32),
        "g3": jnp.ones((1, D), jnp.float32), "b3": jnp.zeros((1, D), jnp.float32),
        "wg": w((2 * D_FF, D)), "bg": jnp.zeros((1, 2 * D_FF), jnp.float32),
        "wf": w((D, D_FF)), "bf": jnp.zeros((1, D), jnp.float32),
    }


def pack_params(P):
    bf16 = jnp.bfloat16

    def heads_in_out(w_torch):          # [H*DH, Din] -> [H, Din, DH]
        return jnp.transpose(w_torch.reshape(H, DH, -1), (0, 2, 1))

    def out_heads(w_torch):             # [D, H*DH] -> [H, DH, D]
        return jnp.transpose(w_torch.reshape(D, H, DH), (1, 2, 0))

    # Leading-axis packing; attention scale folded into the Q weights.
    wqkv1_h = jnp.concatenate([SCALE * heads_in_out(P["wq1"]),
                               heads_in_out(P["wk1"]),
                               heads_in_out(P["wv1"])], axis=0).astype(bf16)   # [3H,D,DH]
    wq2_h = (SCALE * heads_in_out(P["wq2"])).astype(bf16)                       # [H,D,DH]
    wkv2_h = jnp.concatenate([heads_in_out(P["wk2"]),
                              heads_in_out(P["wv2"])], axis=0).astype(bf16)     # [2H,D_CROSS,DH]
    wo12_h = jnp.concatenate([out_heads(P["wo1"]),
                              out_heads(P["wo2"])], axis=0).astype(bf16)        # [2H,DH,D]
    wg_t = P["wg"].T.astype(bf16)                                               # [D,2*D_FF]
    wf_t = P["wf"].T.astype(bf16)                                               # [D_FF,D]

    small = jnp.concatenate([P["g1"], P["b1"], P["bo1"],
                             P["g2"], P["b2"], P["bo2"],
                             P["g3"], P["b3"], P["bf"]], axis=0)                # [9,D]
    small = jnp.pad(small, ((0, 0), (0, 2 * D_FF - D)))                         # [9,2*D_FF]
    vecs = jnp.concatenate([small, P["bg"]], axis=0)                            # [10,2*D_FF]

    return wqkv1_h, wq2_h, wkv2_h, wo12_h, wg_t, wf_t, vecs


if __name__ == "__main__":
    key = jax.random.PRNGKey(0)
    k_h, k_e, k_p = jax.random.split(key, 3)
    hidden = jax.random.normal(k_h, (B, S, D), dtype=jnp.float32)
    enc = jax.random.normal(k_e, (B, S_ENC, D_CROSS), dtype=jnp.float32)
    P = make_params(k_p)
    packed = pack_params(P)

    out = jax.block_until_ready(run_block(hidden, enc, *packed))
    ref = jax.block_until_ready(reference(hidden, enc, P))

    np.testing.assert_allclose(np.asarray(out), np.asarray(ref),
                               rtol=2e-2, atol=2e-2)
    assert out.shape == (B, S, D) and np.all(np.isfinite(np.asarray(out)))
    print("KERNEL_OK")
</pallas_src>

<mosaic_0001>
module attributes {stable_mosaic.version = 11 : i64} {
  func.func @transformer_block_kernel(%arg0: i32, %arg1: memref<1x8x32xf32, #tpu.memory_space<vmem>>, %arg2: memref<1x12x64xf32, #tpu.memory_space<vmem>>, %arg3: memref<12x32x8xbf16, #tpu.memory_space<vmem>>, %arg4: memref<4x32x8xbf16, #tpu.memory_space<vmem>>, %arg5: memref<8x64x8xbf16, #tpu.memory_space<vmem>>, %arg6: memref<8x8x32xbf16, #tpu.memory_space<vmem>>, %arg7: memref<32x256xbf16, #tpu.memory_space<vmem>>, %arg8: memref<128x32xbf16, #tpu.memory_space<vmem>>, %arg9: memref<10x256xf32, #tpu.memory_space<vmem>>, %arg10: memref<1x8x32xf32, #tpu.memory_space<vmem>>) attributes {dimension_semantics = [#tpu.dimension_semantics<parallel>], iteration_bounds = array<i64: 2>, scalar_prefetch = 0 : i64, scratch_operands = 0 : i64, tpu.core_type = #tpu.core_type<tc>, window_params = [{transform_indices = @transform_0, window_bounds = array<i64: 1, 8, 32>}, {transform_indices = @transform_1, window_bounds = array<i64: 1, 12, 64>}, {pipeline_mode = #tpu.pipeline_mode<synchronous>, transform_indices = @transform_2, window_bounds = array<i64: 12, 32, 8>}, {pipeline_mode = #tpu.pipeline_mode<synchronous>, transform_indices = @transform_3, window_bounds = array<i64: 4, 32, 8>}, {pipeline_mode = #tpu.pipeline_mode<synchronous>, transform_indices = @transform_4, window_bounds = array<i64: 8, 64, 8>}, {pipeline_mode = #tpu.pipeline_mode<synchronous>, transform_indices = @transform_5, window_bounds = array<i64: 8, 8, 32>}, {pipeline_mode = #tpu.pipeline_mode<synchronous>, transform_indices = @transform_6, window_bounds = array<i64: 32, 256>}, {pipeline_mode = #tpu.pipeline_mode<synchronous>, transform_indices = @transform_7, window_bounds = array<i64: 128, 32>}, {pipeline_mode = #tpu.pipeline_mode<synchronous>, transform_indices = @transform_8, window_bounds = array<i64: 10, 256>}, {transform_indices = @transform_9, window_bounds = array<i64: 1, 8, 32>}]} {
    %c0 = arith.constant 0 : index
    %c0_0 = arith.constant 0 : index
    %c0_1 = arith.constant 0 : index
    %0 = vector.load %arg1[%c0, %c0_0, %c0_1] : memref<1x8x32xf32, #tpu.memory_space<vmem>>, vector<1x8x32xf32>
    %1 = vector.shape_cast %0 : vector<1x8x32xf32> to vector<8x32xf32>
    %c0_2 = arith.constant 0 : index
    %c0_3 = arith.constant 0 : index
    %c0_4 = arith.constant 0 : index
    %2 = vector.load %arg2[%c0_2, %c0_3, %c0_4] : memref<1x12x64xf32, #tpu.memory_space<vmem>>, vector<1x12x64xf32>
    %3 = vector.shape_cast %2 : vector<1x12x64xf32> to vector<12x64xf32>
    %c0_5 = arith.constant 0 : index
    %c0_6 = arith.constant 0 : index
    %4 = vector.load %arg9[%c0_5, %c0_6] : memref<10x256xf32, #tpu.memory_space<vmem>>, vector<1x32xf32>
    %c1 = arith.constant 1 : index
    %c0_7 = arith.constant 0 : index
    %5 = vector.load %arg9[%c1, %c0_7] : memref<10x256xf32, #tpu.memory_space<vmem>>, vector<1x32xf32>
    %cst = arith.constant dense<0.000000e+00> : vector<8xf32>
    %6 = vector.multi_reduction <add>, %1, %cst [1] : vector<8x32xf32> to vector<8xf32>
    %7 = vector.shape_cast %6 : vector<8xf32> to vector<8x1xf32>
    %cst_8 = arith.constant 3.200000e+01 : f32
    %8 = vector.broadcast %cst_8 : f32 to vector<8x1xf32>
    %9 = arith.divf %7, %8 : vector<8x1xf32>
    %10 = vector.broadcast %9 : vector<8x1xf32> to vector<8x32xf32>
    %11 = arith.subf %1, %10 : vector<8x32xf32>
    %12 = arith.mulf %11, %11 : vector<8x32xf32>
    %cst_9 = arith.constant dense<0.000000e+00> : vector<8xf32>
    %13 = vector.multi_reduction <add>, %12, %cst_9 [1] : vector<8x32xf32> to vector<8xf32>
    %14 = vector.shape_cast %13 : vector<8xf32> to vector<8x1xf32>
    %cst_10 = arith.constant 3.200000e+01 : f32
    %15 = vector.broadcast %cst_10 : f32 to vector<8x1xf32>
    %16 = arith.divf %14, %15 : vector<8x1xf32>
    %17 = vector.broadcast %9 : vector<8x1xf32> to vector<8x32xf32>
    %18 = arith.subf %1, %17 : vector<8x32xf32>
    %cst_11 = arith.constant 9.99999974E-6 : f32
    %19 = vector.broadcast %cst_11 : f32 to vector<8x1xf32>
    %20 = arith.addf %16, %19 : vector<8x1xf32>
    %21 = math.rsqrt %20 : vector<8x1xf32>
    %22 = vector.broadcast %21 : vector<8x1xf32> to vector<8x32xf32>
    %23 = arith.mulf %18, %22 : vector<8x32xf32>
    %24 = vector.broadcast %4 : vector<1x32xf32> to vector<8x32xf32>
    %25 = arith.mulf %23, %24 : vector<8x32xf32>
    %26 = vector.broadcast %5 : vector<1x32xf32> to vector<8x32xf32>
    %27 = arith.addf %25, %26 : vector<8x32xf32>
    %c0_12 = arith.constant 0 : index
    %c0_13 = arith.constant 0 : index
    %c0_14 = arith.constant 0 : index
    %28 = vector.load %arg3[%c0_12, %c0_13, %c0_14] : memref<12x32x8xbf16, #tpu.memory_space<vmem>>, vector<12x32x8xbf16>
    %29 = arith.truncf %27 : vector<8x32xf32> to vector<8x32xbf16>
    %30 = vector.shape_cast %29 : vector<8x32xbf16> to vector<1x8x32xbf16>
    %31 = vector.broadcast %30 : vector<1x8x32xbf16> to vector<12x8x32xbf16>
    %cst_15 = arith.constant dense<0.000000e+00> : vector<12x8x8xf32>
    %32 = tpu.matmul %31, %28, %cst_15 {dimension_numbers = #tpu.dot_dimension_numbers<[2], [1], [1], [2], [0, 0, 0, 1, 1, 2], [0], [0]>} : vector<12x8x32xbf16>, vector<12x32x8xbf16>, vector<12x8x8xf32> -> vector<12x8x8xf32>
    %33 = vector.extract_strided_slice %32 {offsets = [0, 0, 0], sizes = [4, 8, 8], strides = [1, 1, 1]} : vector<12x8x8xf32> to vector<4x8x8xf32>
    %34 = vector.extract_strided_slice %32 {offsets = [4, 0, 0], sizes = [4, 8, 8], strides = [1, 1, 1]} : vector<12x8x8xf32> to vector<4x8x8xf32>
    %35 = vector.extract_strided_slice %32 {offsets = [8, 0, 0], sizes = [4, 8, 8], strides = [1, 1, 1]} : vector<12x8x8xf32> to vector<4x8x8xf32>
    %c0_16 = arith.constant 0 : index
    %c0_17 = arith.constant 0 : index
    %c0_18 = arith.constant 0 : index
    %36 = vector.load %arg6[%c0_16, %c0_17, %c0_18] : memref<8x8x32xbf16, #tpu.memory_space<vmem>>, vector<4x8x32xbf16>
    %c2 = arith.constant 2 : index
    %c0_19 = arith.constant 0 : index
    %37 = vector.load %arg9[%c2, %c0_19] : memref<10x256xf32, #tpu.memory_space<vmem>>, vector<1x32xf32>
    %38 = arith.truncf %33 : vector<4x8x8xf32> to vector<4x8x8xbf16>
    %39 = arith.truncf %34 : vector<4x8x8xf32> to vector<4x8x8xbf16>
    %cst_20 = arith.constant dense<0.000000e+00> : vector<4x8x8xf32>
    %40 = tpu.matmul %38, %39, %cst_20 {dimension_numbers = #tpu.dot_dimension_numbers<[2], [2], [1], [1], [0, 0, 0, 1, 1, 1], [0], [0]>} : vector<4x8x8xbf16>, vector<4x8x8xbf16>, vector<4x8x8xf32> -> vector<4x8x8xf32>
    %cst_21 = arith.constant dense<0xFF800000> : vector<4x8xf32>
    %41 = vector.multi_reduction <maximumf>, %40, %cst_21 [2] : vector<4x8x8xf32> to vector<4x8xf32>
    %42 = vector.shape_cast %41 : vector<4x8xf32> to vector<4x8x1xf32>
    %43 = vector.broadcast %42 : vector<4x8x1xf32> to vector<4x8x8xf32>
    %44 = arith.subf %40, %43 : vector<4x8x8xf32>
    %45 = math.exp %44 : vector<4x8x8xf32>
    %cst_22 = arith.constant dense<0.000000e+00> : vector<4x8xf32>
    %46 = vector.multi_reduction <add>, %45, %cst_22 [2] : vector<4x8x8xf32> to vector<4x8xf32>
    %47 = vector.shape_cast %46 : vector<4x8xf32> to vector<4x8x1xf32>
    %48 = tpu.reciprocal %47 {approx = true} : vector<4x8x1xf32> -> vector<4x8x1xf32>
    %49 = vector.broadcast %48 : vector<4x8x1xf32> to vector<4x8x8xf32>
    %50 = arith.mulf %45, %49 : vector<4x8x8xf32>
    %51 = arith.truncf %50 : vector<4x8x8xf32> to vector<4x8x8xbf16>
    %52 = arith.truncf %35 : vector<4x8x8xf32> to vector<4x8x8xbf16>
    %cst_23 = arith.constant dense<0.000000e+00> : vector<4x8x8xf32>
    %53 = tpu.matmul %51, %52, %cst_23 {dimension_numbers = #tpu.dot_dimension_numbers<[2], [1], [1], [2], [0, 0, 0, 1, 1, 2], [0], [0]>} : vector<4x8x8xbf16>, vector<4x8x8xbf16>, vector<4x8x8xf32> -> vector<4x8x8xf32>
    %54 = arith.truncf %53 : vector<4x8x8xf32> to vector<4x8x8xbf16>
    %cst_24 = arith.constant dense<0.000000e+00> : vector<4x8x32xf32>
    %55 = tpu.matmul %54, %36, %cst_24 {dimension_numbers = #tpu.dot_dimension_numbers<[2], [1], [1], [2], [0, 0, 0, 1, 1, 2], [0], [0]>} : vector<4x8x8xbf16>, vector<4x8x32xbf16>, vector<4x8x32xf32> -> vector<4x8x32xf32>
    %cst_25 = arith.constant dense<0.000000e+00> : vector<8x32xf32>
    %56 = vector.multi_reduction <add>, %55, %cst_25 [0] : vector<4x8x32xf32> to vector<8x32xf32>
    %57 = vector.broadcast %37 : vector<1x32xf32> to vector<8x32xf32>
    %58 = arith.addf %56, %57 : vector<8x32xf32>
    %59 = arith.addf %58, %1 : vector<8x32xf32>
    %c3 = arith.constant 3 : index
    %c0_26 = arith.constant 0 : index
    %60 = vector.load %arg9[%c3, %c0_26] : memref<10x256xf32, #tpu.memory_space<vmem>>, vector<1x32xf32>
    %c4 = arith.constant 4 : index
    %c0_27 = arith.constant 0 : index
    %61 = vector.load %arg9[%c4, %c0_27] : memref<10x256xf32, #tpu.memory_space<vmem>>, vector<1x32xf32>
    %cst_28 = arith.constant dense<0.000000e+00> : vector<8xf32>
    %62 = vector.multi_reduction <add>, %59, %cst_28 [1] : vector<8x32xf32> to vector<8xf32>
    %63 = vector.shape_cast %62 : vector<8xf32> to vector<8x1xf32>
    %cst_29 = arith.constant 3.200000e+01 : f32
    %64 = vector.broadcast %cst_29 : f32 to vector<8x1xf32>
    %65 = arith.divf %63, %64 : vector<8x1xf32>
    %66 = vector.broadcast %65 : vector<8x1xf32> to vector<8x32xf32>
    %67 = arith.subf %59, %66 : vector<8x32xf32>
    %68 = arith.mulf %67, %67 : vector<8x32xf32>
    %cst_30 = arith.constant dense<0.000000e+00> : vector<8xf32>
    %69 = vector.multi_reduction <add>, %68, %cst_30 [1] : vector<8x32xf32> to vector<8xf32>
    %70 = vector.shape_cast %69 : vector<8xf32> to vector<8x1xf32>
    %cst_31 = arith.constant 3.200000e+01 : f32
    %71 = vector.broadcast %cst_31 : f32 to vector<8x1xf32>
    %72 = arith.divf %70, %71 : vector<8x1xf32>
    %73 = vector.broadcast %65 : vector<8x1xf32> to vector<8x32xf32>
    %74 = arith.subf %59, %73 : vector<8x32xf32>
    %cst_32 = arith.constant 9.99999974E-6 : f32
    %75 = vector.broadcast %cst_32 : f32 to vector<8x1xf32>
    %76 = arith.addf %72, %75 : vector<8x1xf32>
    %77 = math.rsqrt %76 : vector<8x1xf32>
    %78 = vector.broadcast %77 : vector<8x1xf32> to vector<8x32xf32>
    %79 = arith.mulf %74, %78 : vector<8x32xf32>
    %80 = vector.broadcast %60 : vector<1x32xf32> to vector<8x32xf32>
    %81 = arith.mulf %79, %80 : vector<8x32xf32>
    %82 = vector.broadcast %61 : vector<1x32xf32> to vector<8x32xf32>
    %83 = arith.addf %81, %82 : vector<8x32xf32>
    %c0_33 = arith.constant 0 : index
    %c0_34 = arith.constant 0 : index
    %c0_35 = arith.constant 0 : index
    %84 = vector.load %arg4[%c0_33, %c0_34, %c0_35] : memref<4x32x8xbf16, #tpu.memory_space<vmem>>, vector<4x32x8xbf16>
    %85 = arith.truncf %83 : vector<8x32xf32> to vector<8x32xbf16>
    %86 = vector.shape_cast %85 : vector<8x32xbf16> to vector<1x8x32xbf16>
    %87 = vector.broadcast %86 : vector<1x8x32xbf16> to vector<4x8x32xbf16>
    %cst_36 = arith.constant dense<0.000000e+00> : vector<4x8x8xf32>
    %88 = tpu.matmul %87, %84, %cst_36 {dimension_numbers = #tpu.dot_dimension_numbers<[2], [1], [1], [2], [0, 0, 0, 1, 1, 2], [0], [0]>} : vector<4x8x32xbf16>, vector<4x32x8xbf16>, vector<4x8x8xf32> -> vector<4x8x8xf32>
    %c0_37 = arith.constant 0 : index
    %c0_38 = arith.constant 0 : index
    %c0_39 = arith.constant 0 : index
    %89 = vector.load %arg5[%c0_37, %c0_38, %c0_39] : memref<8x64x8xbf16, #tpu.memory_space<vmem>>, vector<8x64x8xbf16>
    %90 = arith.truncf %3 : vector<12x64xf32> to vector<12x64xbf16>
    %91 = vector.shape_cast %90 : vector<12x64xbf16> to vector<1x12x64xbf16>
    %92 = vector.broadcast %91 : vector<1x12x64xbf16> to vector<8x12x64xbf16>
    %cst_40 = arith.constant dense<0.000000e+00> : vector<8x12x8xf32>
    %93 = tpu.matmul %92, %89, %cst_40 {dimension_numbers = #tpu.dot_dimension_numbers<[2], [1], [1], [2], [0, 0, 0, 1, 1, 2], [0], [0]>} : vector<8x12x64xbf16>, vector<8x64x8xbf16>, vector<8x12x8xf32> -> vector<8x12x8xf32>
    %94 = vector.extract_strided_slice %93 {offsets = [0, 0, 0], sizes = [4, 12, 8], strides = [1, 1, 1]} : vector<8x12x8xf32> to vector<4x12x8xf32>
    %95 = vector.extract_strided_slice %93 {offsets = [4, 0, 0], sizes = [4, 12, 8], strides = [1, 1, 1]} : vector<8x12x8xf32> to vector<4x12x8xf32>
    %c4_41 = arith.constant 4 : index
    %c0_42 = arith.constant 0 : index
    %c0_43 = arith.constant 0 : index
    %96 = vector.load %arg6[%c4_41, %c0_42, %c0_43] : memref<8x8x32xbf16, #tpu.memory_space<vmem>>, vector<4x8x32xbf16>
    %c5 = arith.constant 5 : index
    %c0_44 = arith.constant 0 : index
    %97 = vector.load %arg9[%c5, %c0_44] : memref<10x256xf32, #tpu.memory_space<vmem>>, vector<1x32xf32>
    %98 = arith.truncf %88 : vector<4x8x8xf32> to vector<4x8x8xbf16>
    %99 = arith.truncf %94 : vector<4x12x8xf32> to vector<4x12x8xbf16>
    %cst_45 = arith.constant dense<0.000000e+00> : vector<4x8x12xf32>
    %100 = tpu.matmul %98, %99, %cst_45 {dimension_numbers = #tpu.dot_dimension_numbers<[2], [2], [1], [1], [0, 0, 0, 1, 1, 1], [0], [0]>} : vector<4x8x8xbf16>, vector<4x12x8xbf16>, vector<4x8x12xf32> -> vector<4x8x12xf32>
    %cst_46 = arith.constant dense<0xFF800000> : vector<4x8xf32>
    %101 = vector.multi_reduction <maximumf>, %100, %cst_46 [2] : vector<4x8x12xf32> to vector<4x8xf32>
    %102 = vector.shape_cast %101 : vector<4x8xf32> to vector<4x8x1xf32>
    %103 = vector.broadcast %102 : vector<4x8x1xf32> to vector<4x8x12xf32>
    %104 = arith.subf %100, %103 : vector<4x8x12xf32>
    %105 = math.exp %104 : vector<4x8x12xf32>
    %cst_47 = arith.constant dense<0.000000e+00> : vector<4x8xf32>
    %106 = vector.multi_reduction <add>, %105, %cst_47 [2] : vector<4x8x12xf32> to vector<4x8xf32>
    %107 = vector.shape_cast %106 : vector<4x8xf32> to vector<4x8x1xf32>
    %108 = tpu.reciprocal %107 {approx = true} : vector<4x8x1xf32> -> vector<4x8x1xf32>
    %109 = vector.broadcast %108 : vector<4x8x1xf32> to vector<4x8x12xf32>
    %110 = arith.mulf %105, %109 : vector<4x8x12xf32>
    %111 = arith.truncf %110 : vector<4x8x12xf32> to vector<4x8x12xbf16>
    %112 = arith.truncf %95 : vector<4x12x8xf32> to vector<4x12x8xbf16>
    %cst_48 = arith.constant dense<0.000000e+00> : vector<4x8x8xf32>
    %113 = tpu.matmul %111, %112, %cst_48 {dimension_numbers = #tpu.dot_dimension_numbers<[2], [1], [1], [2], [0, 0, 0, 1, 1, 2], [0], [0]>} : vector<4x8x12xbf16>, vector<4x12x8xbf16>, vector<4x8x8xf32> -> vector<4x8x8xf32>
    %114 = arith.truncf %113 : vector<4x8x8xf32> to vector<4x8x8xbf16>
    %cst_49 = arith.constant dense<0.000000e+00> : vector<4x8x32xf32>
    %115 = tpu.matmul %114, %96, %cst_49 {dimension_numbers = #tpu.dot_dimension_numbers<[2], [1], [1], [2], [0, 0, 0, 1, 1, 2], [0], [0]>} : vector<4x8x8xbf16>, vector<4x8x32xbf16>, vector<4x8x32xf32> -> vector<4x8x32xf32>
    %cst_50 = arith.constant dense<0.000000e+00> : vector<8x32xf32>
    %116 = vector.multi_reduction <add>, %115, %cst_50 [0] : vector<4x8x32xf32> to vector<8x32xf32>
    %117 = vector.broadcast %97 : vector<1x32xf32> to vector<8x32xf32>
    %118 = arith.addf %116, %117 : vector<8x32xf32>
    %119 = arith.addf %118, %59 : vector<8x32xf32>
    %c6 = arith.constant 6 : index
    %c0_51 = arith.constant 0 : index
    %120 = vector.load %arg9[%c6, %c0_51] : memref<10x256xf32, #tpu.memory_space<vmem>>, vector<1x32xf32>
    %c7 = arith.constant 7 : index
    %c0_52 = arith.constant 0 : index
    %121 = vector.load %arg9[%c7, %c0_52] : memref<10x256xf32, #tpu.memory_space<vmem>>, vector<1x32xf32>
    %cst_53 = arith.constant dense<0.000000e+00> : vector<8xf32>
    %122 = vector.multi_reduction <add>, %119, %cst_53 [1] : vector<8x32xf32> to vector<8xf32>
    %123 = vector.shape_cast %122 : vector<8xf32> to vector<8x1xf32>
    %cst_54 = arith.constant 3.200000e+01 : f32
    %124 = vector.broadcast %cst_54 : f32 to vector<8x1xf32>
    %125 = arith.divf %123, %124 : vector<8x1xf32>
    %126 = vector.broadcast %125 : vector<8x1xf32> to vector<8x32xf32>
    %127 = arith.subf %119, %126 : vector<8x32xf32>
    %128 = arith.mulf %127, %127 : vector<8x32xf32>
    %cst_55 = arith.constant dense<0.000000e+00> : vector<8xf32>
    %129 = vector.multi_reduction <add>, %128, %cst_55 [1] : vector<8x32xf32> to vector<8xf32>
    %130 = vector.shape_cast %129 : vector<8xf32> to vector<8x1xf32>
    %cst_56 = arith.constant 3.200000e+01 : f32
    %131 = vector.broadcast %cst_56 : f32 to vector<8x1xf32>
    %132 = arith.divf %130, %131 : vector<8x1xf32>
    %133 = vector.broadcast %125 : vector<8x1xf32> to vector<8x32xf32>
    %134 = arith.subf %119, %133 : vector<8x32xf32>
    %cst_57 = arith.constant 9.99999974E-6 : f32
    %135 = vector.broadcast %cst_57 : f32 to vector<8x1xf32>
    %136 = arith.addf %132, %135 : vector<8x1xf32>
    %137 = math.rsqrt %136 : vector<8x1xf32>
    %138 = vector.broadcast %137 : vector<8x1xf32> to vector<8x32xf32>
    %139 = arith.mulf %134, %138 : vector<8x32xf32>
    %140 = vector.broadcast %120 : vector<1x32xf32> to vector<8x32xf32>
    %141 = arith.mulf %139, %140 : vector<8x32xf32>
    %142 = vector.broadcast %121 : vector<1x32xf32> to vector<8x32xf32>
    %143 = arith.addf %141, %142 : vector<8x32xf32>
    %144 = arith.truncf %143 : vector<8x32xf32> to vector<8x32xbf16>
    %c0_58 = arith.constant 0 : index
    %c0_59 = arith.constant 0 : index
    %145 = vector.load %arg7[%c0_58, %c0_59] : memref<32x256xbf16, #tpu.memory_space<vmem>>, vector<32x256xbf16>
    %cst_60 = arith.constant dense<0.000000e+00> : vector<8x256xf32>
    %146 = tpu.matmul %144, %145, %cst_60 {dimension_numbers = #tpu.dot_dimension_numbers<[1], [0], [0], [1], [0, 0, 1, 1], [], []>} : vector<8x32xbf16>, vector<32x256xbf16>, vector<8x256xf32> -> vector<8x256xf32>
    %c9 = arith.constant 9 : index
    %c0_61 = arith.constant 0 : index
    %147 = vector.load %arg9[%c9, %c0_61] : memref<10x256xf32, #tpu.memory_space<vmem>>, vector<1x256xf32>
    %148 = vector.broadcast %147 : vector<1x256xf32> to vector<8x256xf32>
    %149 = arith.addf %146, %148 : vector<8x256xf32>
    %150 = vector.extract_strided_slice %149 {offsets = [0, 0], sizes = [8, 128], strides = [1, 1]} : vector<8x256xf32> to vector<8x128xf32>
    %151 = vector.extract_strided_slice %149 {offsets = [0, 128], sizes = [8, 128], strides = [1, 1]} : vector<8x256xf32> to vector<8x128xf32>
    %152 = arith.mulf %151, %151 : vector<8x128xf32>
    %153 = arith.mulf %151, %152 : vector<8x128xf32>
    %cst_62 = arith.constant 4.471500e-02 : f32
    %154 = vector.broadcast %cst_62 : f32 to vector<8x128xf32>
    %155 = arith.mulf %154, %153 : vector<8x128xf32>
    %156 = arith.addf %151, %155 : vector<8x128xf32>
    %cst_63 = arith.constant 0.797884583 : f32
    %157 = vector.broadcast %cst_63 : f32 to vector<8x128xf32>
    %158 = arith.mulf %157, %156 : vector<8x128xf32>
    %159 = math.tanh %158 : vector<8x128xf32>
    %cst_64 = arith.constant 1.000000e+00 : f32
    %160 = vector.broadcast %cst_64 : f32 to vector<8x128xf32>
    %161 = arith.addf %160, %159 : vector<8x128xf32>
    %cst_65 = arith.constant 5.000000e-01 : f32
    %162 = vector.broadcast %cst_65 : f32 to vector<8x128xf32>
    %163 = arith.mulf %162, %161 : vector<8x128xf32>
    %164 = arith.mulf %151, %163 : vector<8x128xf32>
    %165 = arith.mulf %150, %164 : vector<8x128xf32>
    %166 = arith.truncf %165 : vector<8x128xf32> to vector<8x128xbf16>
    %c0_66 = arith.constant 0 : index
    %c0_67 = arith.constant 0 : index
    %167 = vector.load %arg8[%c0_66, %c0_67] : memref<128x32xbf16, #tpu.memory_space<vmem>>, vector<128x32xbf16>
    %cst_68 = arith.constant dense<0.000000e+00> : vector<8x32xf32>
    %168 = tpu.matmul %166, %167, %cst_68 {dimension_numbers = #tpu.dot_dimension_numbers<[1], [0], [0], [1], [0, 0, 1, 1], [], []>} : vector<8x128xbf16>, vector<128x32xbf16>, vector<8x32xf32> -> vector<8x32xf32>
    %c8 = arith.constant 8 : index
    %c0_69 = arith.constant 0 : index
    %169 = vector.load %arg9[%c8, %c0_69] : memref<10x256xf32, #tpu.memory_space<vmem>>, vector<1x32xf32>
    %170 = vector.broadcast %169 : vector<1x32xf32> to vector<8x32xf32>
    %171 = arith.addf %168, %170 : vector<8x32xf32>
    %172 = arith.addf %171, %119 : vector<8x32xf32>
    %c0_70 = arith.constant 0 : index
    %c0_71 = arith.constant 0 : index
    %c0_72 = arith.constant 0 : index
    %173 = vector.load %arg10[%c0_70, %c0_71, %c0_72] : memref<1x8x32xf32, #tpu.memory_space<vmem>>, vector<1x8x32xf32>
    %174 = vector.shape_cast %173 : vector<1x8x32xf32> to vector<8x32xf32>
    %175 = vector.shape_cast %172 : vector<8x32xf32> to vector<1x8x32xf32>
    tpu.vector_store %arg10[%c0_70, %c0_71, %c0_72], %175 {strides = array<i32>} : memref<1x8x32xf32, #tpu.memory_space<vmem>>, vector<1x8x32xf32>,
    return
  }
  func.func @transform_0(%arg0: i32) -> (i32, i32, i32) {
    %c0_i32 = arith.constant 0 : i32
    %c0_i32_0 = arith.constant 0 : i32
    %c0_i32_1 = arith.constant 0 : i32
    return %arg0, %c0_i32, %c0_i32_0 : i32, i32, i32
  }
  func.func @transform_1(%arg0: i32) -> (i32, i32, i32) {
    %c0_i32 = arith.constant 0 : i32
    %c0_i32_0 = arith.constant 0 : i32
    %c0_i32_1 = arith.constant 0 : i32
    return %arg0, %c0_i32, %c0_i32_0 : i32, i32, i32
  }
  func.func @transform_2(%arg0: i32) -> (i32, i32, i32) {
    %c0_i32 = arith.constant 0 : i32
    %c0_i32_0 = arith.constant 0 : i32
    %c0_i32_1 = arith.constant 0 : i32
    %c0_i32_2 = arith.constant 0 : i32
    return %c0_i32, %c0_i32_0, %c0_i32_1 : i32, i32, i32
  }
  func.func @transform_3(%arg0: i32) -> (i32, i32, i32) {
    %c0_i32 = arith.constant 0 : i32
    %c0_i32_0 = arith.constant 0 : i32
    %c0_i32_1 = arith.constant 0 : i32
    %c0_i32_2 = arith.constant 0 : i32
    return %c0_i32, %c0_i32_0, %c0_i32_1 : i32, i32, i32
  }
  func.func @transform_4(%arg0: i32) -> (i32, i32, i32) {
    %c0_i32 = arith.constant 0 : i32
    %c0_i32_0 = arith.constant 0 : i32
    %c0_i32_1 = arith.constant 0 : i32
    %c0_i32_2 = arith.constant 0 : i32
    return %c0_i32, %c0_i32_0, %c0_i32_1 : i32, i32, i32
  }
  func.func @transform_5(%arg0: i32) -> (i32, i32, i32) {
    %c0_i32 = arith.constant 0 : i32
    %c0_i32_0 = arith.constant 0 : i32
    %c0_i32_1 = arith.constant 0 : i32
    %c0_i32_2 = arith.constant 0 : i32
    return %c0_i32, %c0_i32_0, %c0_i32_1 : i32, i32, i32
  }
  func.func @transform_6(%arg0: i32) -> (i32, i32) {
    %c0_i32 = arith.constant 0 : i32
    %c0_i32_0 = arith.constant 0 : i32
    %c0_i32_1 = arith.constant 0 : i32
    return %c0_i32, %c0_i32_0 : i32, i32
  }
  func.func @transform_7(%arg0: i32) -> (i32, i32) {
    %c0_i32 = arith.constant 0 : i32
    %c0_i32_0 = arith.constant 0 : i32
    %c0_i32_1 = arith.constant 0 : i32
    return %c0_i32, %c0_i32_0 : i32, i32
  }
  func.func @transform_8(%arg0: i32) -> (i32, i32) {
    %c0_i32 = arith.constant 0 : i32
    %c0_i32_0 = arith.constant 0 : i32
    %c0_i32_1 = arith.constant 0 : i32
    return %c0_i32, %c0_i32_0 : i32, i32
  }
  func.func @transform_9(%arg0: i32) -> (i32, i32, i32) {
    %c0_i32 = arith.constant 0 : i32
    %c0_i32_0 = arith.constant 0 : i32
    %c0_i32_1 = arith.constant 0 : i32
    return %arg0, %c0_i32, %c0_i32_0 : i32, i32, i32
  }
}

</mosaic_0001>

<bundles_post_ra>
// kernel: run_block.1
= control target key start
LH: loop header
LB: loop body
LE: loop exit
PB: predicated region body
PF: predicated region fallthrough
CT: control target
= control target key end

     0   :  { %14 = vsyncpa [#allocation3], 0  ;;  %s3353_s0 = inlined_call_operand.vmem [shape: f32[2,8,32], index: 0, kind: input, shape index: {}]   ;;  %s3354_s1 = inlined_call_operand.vmem [shape: f32[2,12,64], index: 1, kind: input, shape index: {}]   ;;  %s3355_s2 = inlined_call_operand.vmem [shape: bf16[12,32,8], index: 2, kind: input, shape index: {}]   ;;  %s3356_s3 = inlined_call_operand.vmem [shape: bf16[4,32,8], index: 3, kind: input, shape index: {}]   ;;  %s3357_s4 = inlined_call_operand.vmem [shape: bf16[8,64,8], index: 4, kind: input, shape index: {}]   ;;  %s3358_s5 = inlined_call_operand.vmem [shape: bf16[8,8,32], index: 5, kind: input, shape index: {}]   ;;  %s3359_s6 = inlined_call_operand.vmem [shape: bf16[32,256], index: 6, kind: input, shape index: {}]   ;;  %s3360_s7 = inlined_call_operand.vmem [shape: bf16[128,32], index: 7, kind: input, shape index: {}]   ;;  %s3361_s8 = inlined_call_operand.vmem [shape: f32[10,256], index: 8, kind: input, shape index: {}]   ;;  %s3362_s9 = inlined_call_operand.hbm [shape: f32[2,8,32], index: 9, kind: output, shape index: {}]  }
   0x1   :  { %16 = vsyncpa [#allocation3 + $0x1], 0  ;;  %s2838_s30 = smov 0   ;;  %s2840_s10 = smov 0  }
   0x2   :  { %s2842_s11 = smov 0   ;;  %s2844_s12 = smov 0  }
   0x3 LB: > { %s2859_s13 = sadd.s32 4294967295, %s2785_s12   ;;  %s2193_s14 = sadd.s32 4294967294, %s2785_s12   ;;  %s2785_s12 = sphi %s2844_s12, %s3368_s12   ;;  %s2781_s11 = sphi %s2842_s11, %s3367_s11   ;;  %s2777_s10 = sphi %s2840_s10, %s3366_s10   ;;  %s2773_s30 = sphi %s2838_s30, %s3365_s30  }
   0x4   : > { %s2863_s15 = sadd.s32 1, %s2785_s12   ;;  %s228_s16 = sadd.s32 1, %s2781_s11 }
   0x5   : > { %s225_s17 = ssub.s32 %s2785_s12, %s2863_s15  ;;  %p238_p0 = scmp.ne.s32.totalorder %s2781_s11, %s2777_s10 }
   0x6   : > { %p226_p1 = scmp.eq.s32.totalorder %s225_s17, 0  ;;  %p239_p2 = scmp.eq.s32.totalorder %s2859_s13, 1 }
   0x7   : > { %p244_p3 = scmp.ne.s32.totalorder %s2777_s10, %s2773_s30  ;;  %p245_p4 = scmp.eq.s32.totalorder %s2193_s14, 1 }
   0x8   : > { %s2874_s18 = scalar_select %p226_p1, %s2781_s11, %s228_s16  }
   0x9   : > { %p2876_p5 = por %p239_p2, %p238_p0  ;;  %p2880_p6 = por %p245_p4, %p244_p3 }
   0xa   : > { %p2196_p7 = scmp.ge.s32.totalorder %s2785_s12, 1  ;;  %p299_p8 = scmp.lt.s32.totalorder %s2785_s12, 3 }
   0xc   : > { %p300_p9 = pnand %p2196_p7, %p299_p8 }
   0xd   : > { %p339_p10 = scmp.lt.s32.totalorder (!%p300_p9), %s2859_s13, 1  ;;  %s2561_s17 = sshll.u32 (!%p300_p9), %s2859_s13, 3 }
   0xe   : > { %303 = sbr.rel (%p300_p9) target bundleno = 2800 (0xaf0), region = 56  ;;  %s2117_s23 = scalar_lea.hbm (!%p300_p9), %s3362_s9, %s2561_s17 }
   0xf   : > { %s2121_s28 = sshll.u32 (!%p300_p9), %s2117_s23, 4  ;;  %s2122_s28 = int_to_ptr.hbm [resolvable:$true] %s2121_s28 }
  0x10   : > { %s2737_s29 = sshra.s32 (!%p300_p9), %s2122_s28, 4  ;;  %s2738_s29 = int_to_ptr.hbm [resolvable:$true] %s2737_s29 }
  0x11   : > { %s2739_s17 = scalar_lea.hbm (!%p300_p9), %s2738_s29, 8  ;;  %p2744_p0 = scmp.lt.s32.totalorder (!%p300_p9), %s2738_s29, %s3362_s9 }
  0x12   : > { %p2740_p11 = scmp.ne.s32.totalorder (!%p300_p9), %s2738_s29, %s2739_s17 }
  0x13   : > { %s2888_s21 = scalar_select %p339_p10, %s2859_s13, 1  ;;  %vm354_vm0 = vcmask 261120   ;;  %v2787_v2 = vmov 32.0   ;;  %v2566_v14 = vld [vmem:[%s3355_s2 + $0x8] sm:$0xff]  ;;  %v2568_v15 = vld [vmem:[%s3355_s2 + $0x18] sm:$0xff]  ;;  %v2565_v18 = vld [vmem:[%s3355_s2] sm:$0xff] }
  0x14   : > { %2681 = vrcp.f32 %v2787_v2  ;;  %v2570_v16 = vld [vmem:[%s3355_s2 + $0x28] sm:$0xff]  ;;  %456 = vmatpush.bf16.msra.mxu0 %v2566_v14  ;;  %481 = vmatpush.bf16.msra.mxu1 %v2568_v15  ;;  %v2567_v19 = vld [vmem:[%s3355_s2 + $0x10] sm:$0xff]  ;;  %v2569_v20 = vld [vmem:[%s3355_s2 + $0x20] sm:$0xff]  ;;  %vm751_vm5 = vcmask 64512   ;;  %vm883_vm6 = vcmask 1043456   ;;  %vm1287_vm10 = vcmask 523264   ;;  %p2741_p12 = pnand %p2740_p11, %p2876_p5 }
  0x15   : > { %s2198_s22 = sshll.u32 %s2888_s21, 3  ;;  %v2578_v17 = vld [vmem:[%s3355_s2 + $0x68] sm:$0xff]  ;;  %506 = vmatpush.bf16.msra.mxu3 %v2570_v16  ;;  %v2577_v21 = vld [vmem:[%s3355_s2 + $0x60] sm:$0xff]  ;;  %v2572_v23 = vld [vmem:[%s3355_s2 + $0x38] sm:$0xff]  ;;  %s2564_s14 = sshll.u32 %s2888_s21, 4  ;;  %vm1750_vm11 = vcmask 1045504  }
  0x16   : > { %s342_s25 = scalar_lea.vmem %s3353_s0, %s2198_s22  ;;  %606 = vmatpush.bf16.msra.mxu2 %v2578_v17  ;;  %v2574_v24 = vld [vmem:[%s3355_s2 + $0x48] sm:$0xff]  ;;  %v2576_v25 = vld [vmem:[%s3355_s2 + $0x58] sm:$0xff]  ;;  %v2571_v28 = vld [vmem:[%s3355_s2 + $0x30] sm:$0xff]  ;;  %s347_s22 = scalar_lea.vmem %s3354_s1, %s2564_s14  ;;  %vm1685_vm12 = vcmask 97280  }
  0x17   : > { %v2894_v0 = vld [vmem:[%s342_s25] sm:$0xff]  ;;  %v2586_v27 = vld [vmem:[%s3355_s2 + $0xa8] sm:$0xff]  ;;  %v2575_v31 = vld [vmem:[%s3355_s2 + $0x50] sm:$0xff]  ;;  %s336_s14 = sand.u32 1, %s2777_s10   ;;  %p2742_p13 = pneg %p2741_p12 }
  0x18   : > { %v355_v1 = vsel %vm354_vm0, %v2894_v0, 0.0  ;;  %457 = vmatpush.bf16.msra.mxu0 %v2565_v18  ;;  %482 = vmatpush.bf16.msra.mxu1 %v2567_v19  ;;  %v2573_v29 = vld [vmem:[%s3355_s2 + $0x40] sm:$0xff]  ;;  %v2580_v46 = vld [vmem:[%s3355_s2 + $0x78] sm:$0xff]  ;;  %v2582_v47 = vld [vmem:[%s3355_s2 + $0x88] sm:$0xff]  ;;  %s2197_s16 = sshll.u32 %s336_s14, 3  ;;  %s2107_s13 = scalar_lea.sflag [#allocation3], %s336_s14 }
  0x19   : > { %356 = vadd.xlane.f32.xlu0 %v355_v1  ;;  %507 = vmatpush.bf16.msra.mxu3 %v2569_v20  ;;  %v2585_v32 = vld [vmem:[%s3355_s2 + $0xa0] sm:$0xff]  ;;  %v2584_v48 = vld [vmem:[%s3355_s2 + $0x98] sm:$0xff]  ;;  %v2579_v49 = vld [vmem:[%s3355_s2 + $0x70] sm:$0xff]  ;;  %s338_s26 = scalar_lea.vmem [#allocation2], %s2197_s16  ;;  %s2743_s16 = scalar_lea.hbm %s3362_s9, 16 }
  0x1a   : > { %v2682_v3 = vpop.eup %2681  ;;  %607 = vmatpush.bf16.msra.mxu2 %v2577_v21  ;;  %v352_v39 = vld [vmem:[%s3361_s8] ss:$0 sm:$0xff]  ;;  %v353_v42 = vld [vmem:[%s3361_s8 + $0x1] ss:$0 sm:$0xff]  ;;  %v2583_v51 = vld [vmem:[%s3355_s2 + $0x90] sm:$0xff]  ;;  %s2119_s27 = sshll.u32 %s338_s26, 4  ;;  %p2745_p1 = scmp.lt.s32.totalorder %s2743_s16, %s2739_s17  ;;  %s2120_s27 = int_to_ptr.vmem [resolvable:$true] %s2119_s27 }
  0x1b   : > { %v359_v4 = vmul.f32 32.0, %v2682_v3  ;;  %vm363_vm1 = vweird.f32 %v2682_v3  ;;  %v2581_v50 = vld [vmem:[%s3355_s2 + $0x80] sm:$0xff]  ;;  %v2588_v52 = vld [vmem:[%s3355_s2 + $0xb8] sm:$0xff]  ;;  %v2587_v53 = vld [vmem:[%s3355_s2 + $0xb0] sm:$0xff] }
  0x1c   : > { %556 = vmatpush.bf16.msrb.mxu0 %v2574_v24  ;;  %581 = vmatpush.bf16.msrb.mxu1 %v2576_v25  ;;  %p2746_p2 = por %p2745_p1, %p2744_p0 }
  0x1d   : > { %v360_v5 = vsub.f32 1.0, %v359_v4  ;;  %531 = vmatpush.bf16.msrb.mxu3 %v2572_v23 }
  0x1e   : > { %706 = vmatpush.bf16.msrb.mxu2 %v2586_v27  ;;  %p2747_p3 = pnand %p2746_p2, %p2742_p13 }
  0x1f   : > { %v361_v6 = vmul.f32 %v2682_v3, %v360_v5 }
  0x20   : > { %557 = vmatpush.bf16.msrb.mxu0 %v2573_v29  ;;  %582 = vmatpush.bf16.msrb.mxu1 %v2575_v31 }
  0x21   : > { %v362_v7 = vadd.f32 %v2682_v3, %v361_v6  ;;  %532 = vmatpush.bf16.msrb.mxu3 %v2571_v28 }
  0x22   : > { %707 = vmatpush.bf16.msrb.mxu2 %v2585_v32 }
  0x23   : > { %v2898_v8 = vsel %vm363_vm1, %v2682_v3, %v362_v7 }
  0x8c   : > { %v357_v9 = vpop.xlane.xlu0 %356 }
  0x8d   : > { %v365_v10 = vmul.f32 %v2898_v8, %v357_v9 }
  0x8f   : > { %v366_v11 = vsub.f32 %v2894_v0, %v365_v10 }
  0x91   : > { %v367_v12 = vmul.f32 %v366_v11, %v366_v11 }
  0x93   : > { %v368_v13 = vsel %vm354_vm0, %v367_v12, 0.0 }
  0x94   : > { %369 = vadd.xlane.f32.xlu0 %v368_v13 }
 0x107   : > { %v370_v22 = vpop.xlane.xlu0 %369 }
 0x108   : > { %v371_v26 = vmul.f32 %v370_v22, %v2898_v8 }
 0x10a   : > { %v372_v30 = vadd.f32 1e-05, %v371_v26 }
 0x10c   : > { %2683 = vrsqrt.f32 %v372_v30  ;;  %vm379_vm3 = vweird.f32 %v372_v30 }
 0x112   : > { %v2684_v33 = vpop.eup %2683 }
 0x113   : > { %v374_v34 = vmul.f32 %v2684_v33, %v372_v30  ;;  %vm380_vm2 = vweird.f32 %v2684_v33 }
 0x114   : > { %vm381_vm4 = vmor %vm379_vm3, %vm380_vm2 }
 0x115   : > { %v375_v35 = vmul.f32 %v2684_v33, %v374_v34 }
 0x117   : > { %v376_v36 = vmul.f32 0.5, %v375_v35 }
 0x119   : > { %v377_v37 = vsub.f32 1.5, %v376_v36 }
 0x11b   : > { %v378_v38 = vmul.f32 %v2684_v33, %v377_v37 }
 0x11d   : > { %v382_v40 = vsel %vm381_vm4, %v2684_v33, %v378_v38 }
 0x11e   : > { %v383_v41 = vmul.f32 %v382_v40, %v366_v11 }
 0x120   : > { %v384_v43 = vmul.f32 %v383_v41, %v352_v39 }
 0x122   : > { %v385_v44 = vadd.f32 %v384_v43, %v353_v42 }
 0x124   : > { %v434_v45 = vpack.c.bf16 %v385_v44, %v385_v44 }
 0x126   : > { %2209 = vmatmul.msk.bf16.vlgmr.msra.gmra.mxu0 %vm354_vm0, %v434_v45  ;;  %2218 = vmatmul.msk.bf16.vlgmr.msra.gmra.mxu1 %vm354_vm0, %v434_v45 }
 0x127   : > { %2227 = vmatmul.msk.bf16.vlgmr.msra.gmra.mxu3 %vm354_vm0, %v434_v45  ;;  %2263 = vmatmul.msk.bf16.vlgmr.msra.gmra.mxu2 %vm354_vm0, %v434_v45 }
 0x128   : > { %631 = vmatpush.bf16.msra.mxu3 %v2580_v46  ;;  %656 = vmatpush.bf16.msra.mxu0 %v2582_v47 }
 0x129   : > { %681 = vmatpush.bf16.msra.mxu1 %v2584_v48 }
 0x12c   : > { %632 = vmatpush.bf16.msra.mxu3 %v2579_v49  ;;  %657 = vmatpush.bf16.msra.mxu0 %v2581_v50 }
 0x12d   : > { %682 = vmatpush.bf16.msra.mxu1 %v2583_v51 }
 0x136   : > { %2245 = vmatmul.msk.bf16.vlgmr.msrb.gmra.mxu0 %vm354_vm0, %v434_v45  ;;  %2254 = vmatmul.msk.bf16.vlgmr.msrb.gmra.mxu1 %vm354_vm0, %v434_v45 }
 0x137   : > { %2236 = vmatmul.msk.bf16.vlgmr.msrb.gmra.mxu3 %vm354_vm0, %v434_v45  ;;  %2299 = vmatmul.msk.bf16.vlgmr.msrb.gmra.mxu2 %vm354_vm0, %v434_v45 }
 0x138   : > { %731 = vmatpush.bf16.msrb.mxu3 %v2588_v52 }
 0x13c   : > { %732 = vmatpush.bf16.msrb.mxu3 %v2587_v53 }
 0x146   : > { %2281 = vmatmul.msk.bf16.vlgmr.msra.gmra.mxu0 %vm354_vm0, %v434_v45  ;;  %2290 = vmatmul.msk.bf16.vlgmr.msra.gmra.mxu1 %vm354_vm0, %v434_v45 }
 0x147   : > { %2272 = vmatmul.msk.bf16.vlgmr.msra.gmra.mxu3 %vm354_vm0, %v434_v45 }
 0x157   : > { %2308 = vmatmul.msk.bf16.vlgmr.msrb.gmra.mxu3 %vm354_vm0, %v434_v45 }
 0x1a3   : > { %v459_v54 = vpop.f32.mrf.mxu0  ;;  %v484_v55 = vpop.f32.mrf.mxu1 }
 0x1a4   : > { %v743_v14 = vpack.c.bf16 %v459_v54, %v459_v54  ;;  %v744_v15 = vpack.c.bf16 %v484_v55, %v484_v55 }
 0x1aa   : > { %v509_v56 = vpop.f32.mrf.mxu3  ;;  %v609_v57 = vpop.f32.mrf.mxu2 }
 0x1ab   : > { %v749_v58 = vpack.c.bf16 %v609_v57, %v609_v57  ;;  %v461_v59 = vpop.f32.mrf.mxu0  ;;  %v486_v60 = vpop.f32.mrf.mxu1  ;;  %v745_v1 = vpack.c.bf16 %v509_v56, %v509_v56 }
 0x1ad   : > { %v794_v61 = vsel %vm751_vm5, %v749_v58, 0 }
 0x1ae   : > { %803 = vmatpush.bf16.xpose.msra.mxu2 %v794_v61 }
 0x1b2   : > { %v511_v62 = vpop.f32.mrf.mxu3  ;;  %v611_v63 = vpop.f32.mrf.mxu2 }
 0x1b3   : > { %v559_v2 = vpop.f32.mrf.mxu0  ;;  %v584_v3 = vpop.f32.mrf.mxu1 }
 0x1b4   : > { %v747_v4 = vpack.c.bf16 %v559_v2, %v559_v2  ;;  %v748_v5 = vpack.c.bf16 %v584_v3, %v584_v3 }
 0x1b5   : > { %2311 = vmatmul.msk.bf16.vlgmr.msra.gmra.mxu2 %vm751_vm5, %v745_v1 }
 0x1b6   : > { %v756_v6 = vsel %vm751_vm5, %v747_v4, 0  ;;  %v775_v7 = vsel %vm751_vm5, %v748_v5, 0 }
 0x1b7   : > { %765 = vmatpush.bf16.xpose.msrb.mxu0 %v756_v6  ;;  %784 = vmatpush.bf16.xpose.msrb.mxu1 %v775_v7 }
 0x1ba   : > { %v534_v9 = vpop.f32.mrf.mxu3  ;;  %v709_v10 = vpop.f32.mrf.mxu2 }
 0x1bb   : > { %v878_v11 = vpack.c.bf16 %v709_v10, %v709_v10  ;;  %v561_v12 = vpop.f32.mrf.mxu0  ;;  %v586_v13 = vpop.f32.mrf.mxu1  ;;  %v746_v31 = vpack.c.bf16 %v534_v9, %v534_v9 }
 0x1bd   : > { %v923_v16 = vsel %vm883_vm6, %v878_v11, 0 }
 0x1be   : > { %932 = vmatpush.bf16.msrb.mxu2 %v923_v16  ;;  %2309 = vmatmul.msk.bf16.vlgmr.msrb.gmra.mxu0 %vm751_vm5, %v743_v14 }
 0x1bf   : > { %2310 = vmatmul.msk.bf16.vlgmr.msrb.gmra.mxu1 %vm751_vm5, %v744_v15 }
 0x1c2   : > { %v536_v17 = vpop.f32.mrf.mxu3  ;;  %v711_v18 = vpop.f32.mrf.mxu2 }
 0x1c3   : > { %v659_v19 = vpop.f32.mrf.mxu0  ;;  %v684_v20 = vpop.f32.mrf.mxu1 }
 0x1c4   : > { %v876_v21 = vpack.c.bf16 %v659_v19, %v659_v19  ;;  %v877_v22 = vpack.c.bf16 %v684_v20, %v684_v20 }
 0x1c6   : > { %v885_v23 = vsel %vm883_vm6, %v876_v21, 0  ;;  %v904_v24 = vsel %vm883_vm6, %v877_v22, 0  ;;  %v738_v22 = vld [vmem:[%s3358_s5] sm:$0xf] }
 0x1c7   : > { %894 = vmatpush.bf16.msra.mxu0 %v885_v23  ;;  %913 = vmatpush.bf16.msra.mxu1 %v904_v24  ;;  %v965_v23 = vsel %vm883_vm6, %v738_v22, 0  ;;  %v740_v24 = vld [vmem:[%s3358_s5 + $0x8] sm:$0xf] }
 0x1c8   : > { %v2598_v22 = vld [vmem:[%s3357_s4 + $0x8] sm:$0xff] }
 0x1ca   : > { %v634_v25 = vpop.f32.mrf.mxu3 }
 0x1cb   : > { %v750_v26 = vpack.c.bf16 %v634_v25, %v634_v25  ;;  %v661_v27 = vpop.f32.mrf.mxu0  ;;  %v686_v28 = vpop.f32.mrf.mxu1  ;;  %974 = vmatpush.bf16.msrb.mxu0 %v965_v23  ;;  %v1003_v25 = vsel %vm883_vm6, %v740_v24, 0  ;;  %v2602_v23 = vld [vmem:[%s3357_s4 + $0x28] sm:$0xff] }
 0x1cc   : > { %1012 = vmatpush.bf16.msra.mxu2 %v1003_v25  ;;  %v741_v28 = vld [vmem:[%s3358_s5 + $0xc] sm:$0xf] }
 0x1cd   : > { %v813_v29 = vsel %vm751_vm5, %v750_v26, 0  ;;  %v739_v26 = vld [vmem:[%s3358_s5 + $0x4] sm:$0xf]  ;;  %v2606_v24 = vld [vmem:[%s3357_s4 + $0x48] sm:$0xff] }
 0x1ce   : > { %822 = vmatpush.bf16.xpose.msra.mxu3 %v813_v29  ;;  %v984_v27 = vsel %vm883_vm6, %v739_v26, 0  ;;  %v1022_v29 = vsel %vm883_vm6, %v741_v28, 0  ;;  %v2610_v25 = vld [vmem:[%s3357_s4 + $0x68] sm:$0xff]  ;;  %v2597_v26 = vld [vmem:[%s3357_s4] sm:$0xff] }
 0x1cf   : > { %993 = vmatpush.bf16.msrb.mxu1 %v984_v27  ;;  %v2601_v27 = vld [vmem:[%s3357_s4 + $0x20] sm:$0xff] }
 0x1d0   : > { %v2605_v28 = vld [vmem:[%s3357_s4 + $0x40] sm:$0xff] }
 0x1d2   : > { %v636_v30 = vpop.f32.mrf.mxu3 }
 0x1d5   : > { %2312 = vmatmul.msk.bf16.vlgmr.msra.gmra.mxu3 %vm751_vm5, %v746_v31 }
 0x1da   : > { %v734_v32 = vpop.f32.mrf.mxu3 }
 0x1db   : > { %v879_v33 = vpack.c.bf16 %v734_v32, %v734_v32 }
 0x1dd   : > { %v942_v34 = vsel %vm883_vm6, %v879_v33, 0 }
 0x1de   : > { %951 = vmatpush.bf16.msrb.mxu3 %v942_v34 }
 0x1e2   : > { %v736_v35 = vpop.f32.mrf.mxu3  ;;  %1031 = vmatpush.bf16.msra.mxu3 %v1022_v29  ;;  %v2609_v29 = vld [vmem:[%s3357_s4 + $0x60] sm:$0xff] }
 0x238   : > { %v805_v36 = vpop.f32.mrf.mxu2 }
 0x239   : > { %v834_v37 = vsel %vm751_vm5, %v805_v36, -inf }
 0x23a   : > { %835 = vmax.xlane.f32.xlu1 %v834_v37 }
 0x23b   : > { %v767_v38 = vpop.f32.mrf.mxu0 }
 0x23c   : > { %v786_v39 = vpop.f32.mrf.mxu1  ;;  %v828_v40 = vsel %vm751_vm5, %v767_v38, -inf }
 0x23d   : > { %829 = vmax.xlane.f32.xlu2 %v828_v40  ;;  %v831_v44 = vsel %vm751_vm5, %v786_v39, -inf }
 0x240   : > { %v807_v41 = vpop.f32.mrf.mxu2 }
 0x243   : > { %v769_v42 = vpop.f32.mrf.mxu0 }
 0x244   : > { %v788_v43 = vpop.f32.mrf.mxu1 }
 0x245   : > { %832 = vmax.xlane.f32.xlu2 %v831_v44 }
 0x258   : > { %v824_v45 = vpop.f32.mrf.mxu3 }
 0x259   : > { %v837_v46 = vsel %vm751_vm5, %v824_v45, -inf }
 0x25a   : > { %838 = vmax.xlane.f32.xlu1 %v837_v46 }
 0x260   : > { %v826_v47 = vpop.f32.mrf.mxu3 }
 0x2ad   : > { %v836_v48 = vpop.xlane.xlu1 %835 }
 0x2ae   : > { %v842_v49 = vsub.f32 %v805_v36, %v836_v48 }
 0x2b0   : > { %v848_v50 = vmul.f32 1.442695, %v842_v49  ;;  %v830_v51 = vpop.xlane.xlu2 %829 }
 0x2b1   : > { %v840_v52 = vsub.f32 %v767_v38, %v830_v51 }
 0x2b2   : > { %2685 = vpow2.f32 %v848_v50 }
 0x2b3   : > { %v844_v53 = vmul.f32 1.442695, %v840_v52 }
 0x2b5   : > { %2687 = vpow2.f32 %v844_v53 }
 0x2b8   : > { %v2686_v54 = vpop.eup %2685  ;;  %v833_v55 = vpop.xlane.xlu2 %832 }
 0x2b9   : > { %v841_v56 = vsub.f32 %v786_v39, %v833_v55  ;;  %v858_v57 = vsel %vm751_vm5, %v2686_v54, 0.0 }
 0x2ba   : > { %859 = vadd.xlane.f32.xlu0 %v858_v57 }
 0x2bb   : > { %v2688_v58 = vpop.eup %2687  ;;  %v846_v59 = vmul.f32 1.442695, %v841_v56 }
 0x2bc   : > { %v852_v60 = vsel %vm751_vm5, %v2688_v58, 0.0 }
 0x2bd   : > { %2689 = vpow2.f32 %v846_v59  ;;  %853 = vadd.xlane.f32.xlu2 %v852_v60 }
 0x2c3   : > { %v2690_v61 = vpop.eup %2689 }
 0x2c4   : > { %v855_v62 = vsel %vm751_vm5, %v2690_v61, 0.0 }
 0x2c5   : > { %856 = vadd.xlane.f32.xlu0 %v855_v62 }
 0x2cd   : > { %v839_v63 = vpop.xlane.xlu1 %838 }
 0x2ce   : > { %v843_v1 = vsub.f32 %v824_v45, %v839_v63 }
 0x2d0   : > { %v850_v2 = vmul.f32 1.442695, %v843_v1 }
 0x2d2   : > { %2691 = vpow2.f32 %v850_v2 }
 0x2d8   : > { %v2692_v3 = vpop.eup %2691 }
 0x2d9   : > { %v861_v4 = vsel %vm751_vm5, %v2692_v3, 0.0 }
 0x2da   : > { %862 = vadd.xlane.f32.xlu1 %v861_v4  ;;  %v2594_v4 = vld [vmem:[%s3356_s3 + $0x28] sm:$0xff] }
 0x32d   : > { %v860_v5 = vpop.xlane.xlu0 %859 }
 0x32e   : > { %2693 = vrcp.f32 %v860_v5  ;;  %v2596_v5 = vld [vmem:[%s3356_s3 + $0x38] sm:$0xff] }
 0x330   : > { %v854_v6 = vpop.xlane.xlu2 %853 }
 0x331   : > { %2695 = vrcp.f32 %v854_v6  ;;  %v2589_v6 = vld [vmem:[%s3356_s3] sm:$0xff] }
 0x334   : > { %v2694_v7 = vpop.eup %2693 }
 0x335   : > { %v870_v9 = vmul.f32 %v2694_v7, %v2686_v54  ;;  %v742_v54 = vld [vmem:[%s3361_s8 + $0x2] ss:$0 sm:$0xff]  ;;  %v2591_v7 = vld [vmem:[%s3356_s3 + $0x10] sm:$0xff] }
 0x337   : > { %v2696_v10 = vpop.eup %2695  ;;  %v874_v11 = vpack.c.bf16 %v870_v9, %v870_v9  ;;  %v2593_v9 = vld [vmem:[%s3356_s3 + $0x20] sm:$0xff] }
 0x338   : > { %v868_v12 = vmul.f32 %v2696_v10, %v2688_v58  ;;  %v857_v13 = vpop.xlane.xlu0 %856  ;;  %v2595_v10 = vld [vmem:[%s3356_s3 + $0x30] sm:$0xff] }
 0x339   : > { %2315 = vmatmul.msk.bf16.vlgmr.msrb.gmra.mxu2 %vm751_vm5, %v874_v11  ;;  %2697 = vrcp.f32 %v857_v13  ;;  %v2600_v11 = vld [vmem:[%s3357_s4 + $0x18] sm:$0xff] }
 0x33a   : > { %v872_v14 = vpack.c.bf16 %v868_v12, %v868_v12  ;;  %1160 = vmatpush.bf16.msrb.mxu2 %v2594_v4  ;;  %v2604_v12 = vld [vmem:[%s3357_s4 + $0x38] sm:$0xff] }
 0x33b   : > { %v2608_v13 = vld [vmem:[%s3357_s4 + $0x58] sm:$0xff] }
 0x33c   : > { %2313 = vmatmul.msk.bf16.vlgmr.msra.gmra.mxu0 %vm751_vm5, %v872_v14 }
 0x33e   : > { %1161 = vmatpush.bf16.msrb.mxu2 %v2593_v9 }
 0x33f   : > { %v2698_v15 = vpop.eup %2697 }
 0x340   : > { %v869_v16 = vmul.f32 %v2698_v15, %v2690_v61  ;;  %v2612_v15 = vld [vmem:[%s3357_s4 + $0x78] sm:$0xff] }
 0x342   : > { %v873_v17 = vpack.c.bf16 %v869_v16, %v869_v16 }
 0x344   : > { %2314 = vmatmul.msk.bf16.vlgmr.msra.gmra.mxu1 %vm751_vm5, %v873_v17  ;;  %v2599_v17 = vld [vmem:[%s3357_s4 + $0x10] sm:$0xff] }
 0x34d   : > { %v863_v18 = vpop.xlane.xlu1 %862 }
 0x34e   : > { %2699 = vrcp.f32 %v863_v18  ;;  %v2603_v18 = vld [vmem:[%s3357_s4 + $0x30] sm:$0xff] }
 0x354   : > { %v2700_v19 = vpop.eup %2699 }
 0x355   : > { %v871_v20 = vmul.f32 %v2700_v19, %v2692_v3  ;;  %v2592_v3 = vld [vmem:[%s3356_s3 + $0x18] sm:$0xff]  ;;  %v2607_v19 = vld [vmem:[%s3357_s4 + $0x50] sm:$0xff] }
 0x356   : > { %1135 = vmatpush.bf16.msra.mxu1 %v2592_v3 }
 0x357   : > { %v875_v21 = vpack.c.bf16 %v871_v20, %v871_v20  ;;  %v2611_v20 = vld [vmem:[%s3357_s4 + $0x70] sm:$0xff] }
 0x359   : > { %2316 = vmatmul.msk.bf16.vlgmr.msrb.gmra.mxu3 %vm751_vm5, %v875_v21 }
 0x35a   : > { %1185 = vmatpush.bf16.msrb.mxu3 %v2596_v5  ;;  %1136 = vmatpush.bf16.msra.mxu1 %v2591_v7 }
 0x35e   : > { %1186 = vmatpush.bf16.msrb.mxu3 %v2595_v10 }
 0x3b9   : > { %v896_v30 = vpop.f32.mrf.mxu0 }
 0x3ba   : > { %v957_v31 = vpack.c.bf16 %v896_v30, %v896_v30 }
 0x3bc   : > { %v934_v32 = vpop.f32.mrf.mxu2  ;;  %2317 = vmatmul.msk.bf16.vlgmr.msrb.gmra.mxu0 %vm751_vm5, %v957_v31 }
 0x3bd   : > { %v959_v33 = vpack.c.bf16 %v934_v32, %v934_v32 }
 0x3bf   : > { %2319 = vmatmul.msk.bf16.vlgmr.msra.gmra.mxu2 %vm751_vm5, %v959_v33 }
 0x3c0   : > { %1371 = vmatpush.bf16.msra.mxu2 %v2608_v13 }
 0x3c1   : > { %v898_v34 = vpop.f32.mrf.mxu0  ;;  %v915_v35 = vpop.f32.mrf.mxu1 }
 0x3c2   : > { %v958_v36 = vpack.c.bf16 %v915_v35, %v915_v35 }
 0x3c4   : > { %v936_v37 = vpop.f32.mrf.mxu2  ;;  %2318 = vmatmul.msk.bf16.vlgmr.msrb.gmra.mxu1 %vm751_vm5, %v958_v36  ;;  %1372 = vmatpush.bf16.msra.mxu2 %v2607_v19  ;;  %v1046_v36 = vld [vmem:[%s3361_s8 + $0x3] ss:$0 sm:$0xff] }
 0x3c5   : > { %1333 = vmatpush.bf16.msrb.mxu1 %v2604_v12 }
 0x3c8   : > { %1373 = vmatpush.bf16.msra.mxu2 %v2606_v24 }
 0x3c9   : > { %v917_v38 = vpop.f32.mrf.mxu1  ;;  %1334 = vmatpush.bf16.msrb.mxu1 %v2603_v18 }
 0x3cc   : > { %1374 = vmatpush.bf16.msra.mxu2 %v2605_v28 }
 0x3cd   : > { %1335 = vmatpush.bf16.msrb.mxu1 %v2602_v23 }
 0x3d1   : > { %1336 = vmatpush.bf16.msrb.mxu1 %v2601_v27 }
 0x3dc   : > { %v953_v39 = vpop.f32.mrf.mxu3 }
 0x3dd   : > { %v960_v40 = vpack.c.bf16 %v953_v39, %v953_v39  ;;  %v1047_v39 = vld [vmem:[%s3361_s8 + $0x4] ss:$0 sm:$0xff] }
 0x3df   : > { %2320 = vmatmul.msk.bf16.vlgmr.msra.gmra.mxu3 %vm751_vm5, %v960_v40 }
 0x3e0   : > { %1409 = vmatpush.bf16.msra.mxu3 %v2612_v15 }
 0x3e4   : > { %v955_v41 = vpop.f32.mrf.mxu3  ;;  %1410 = vmatpush.bf16.msra.mxu3 %v2611_v20 }
 0x3e8   : > { %1411 = vmatpush.bf16.msra.mxu3 %v2610_v25 }
 0x3ec   : > { %1412 = vmatpush.bf16.msra.mxu3 %v2609_v29 }
 0x439   : > { %v976_v42 = vpop.f32.mrf.mxu0 }
 0x43a   : > { %v1037_v49 = vsel %vm354_vm0, %v976_v42, 0.0 }
 0x441   : > { %v978_v43 = vpop.f32.mrf.mxu0  ;;  %v995_v44 = vpop.f32.mrf.mxu1 }
 0x442   : > { %v1014_v45 = vpop.f32.mrf.mxu2  ;;  %v1038_v48 = vsel %vm354_vm0, %v995_v44, 0.0  ;;  %v350_v43 = vld [vmem:[%s347_s22] sm:$0xff]  ;;  %v351_v44 = vld [vmem:[%s347_s22 + $0x8] sm:$0xf] }
 0x443   : > { %v1039_v50 = vadd.f32 %v1038_v48, %v1037_v49  ;;  %v1040_v51 = vsel %vm354_vm0, %v1014_v45, 0.0  ;;  %v1256_v45 = vpack.c.bf16 %v350_v43, %v350_v43 }
 0x445   : > { %v1041_v52 = vadd.f32 %v1040_v51, %v1039_v50  ;;  %v2624_v50 = vld [vmem:[%s3357_s4 + $0xd8] sm:$0xff] }
 0x446   : > { %v2616_v51 = vld [vmem:[%s3357_s4 + $0x98] sm:$0xff] }
 0x449   : > { %v997_v46 = vpop.f32.mrf.mxu1 }
 0x44a   : > { %v1016_v47 = vpop.f32.mrf.mxu2  ;;  %v1257_v46 = vpack.c.bf16 %v351_v44, %v351_v44 }
 0x44b   : > { %v1260_v47 = vunpack.c.l.b16 %v1256_v45 }
 0x44c   : > { %v1261_v48 = vunpack.c.l.b16 %v1257_v46 }
 0x44e   : > { %v1262_v49 = vpack.c.b16 %v1261_v48, %v1260_v47 }
 0x462   : > { %v1033_v53 = vpop.f32.mrf.mxu3 }
 0x463   : > { %v1042_v55 = vsel %vm354_vm0, %v1033_v53, 0.0  ;;  %v2628_v53 = vld [vmem:[%s3357_s4 + $0xf8] sm:$0xff] }
 0x464   : > { %v1043_v56 = vadd.f32 %v1042_v55, %v1041_v52  ;;  %v2620_v52 = vld [vmem:[%s3357_s4 + $0xb8] sm:$0xff]  ;;  %v2619_v55 = vld [vmem:[%s3357_s4 + $0xb0] sm:$0xff] }
 0x466   : > { %v1044_v57 = vadd.f32 %v1043_v56, %v742_v54  ;;  %v2615_v54 = vld [vmem:[%s3357_s4 + $0x90] sm:$0xff] }
 0x467   : > { %v2623_v56 = vld [vmem:[%s3357_s4 + $0xd0] sm:$0xff] }
 0x468   : > { %v3046_v58 = vadd.f32 %v1044_v57, %v2894_v0  ;;  %v2590_v0 = vld [vmem:[%s3356_s3 + $0x8] sm:$0xff]  ;;  %v2627_v57 = vld [vmem:[%s3357_s4 + $0xf0] sm:$0xff] }
 0x469   : > { %1110 = vmatpush.bf16.msra.mxu0 %v2590_v0  ;;  %v2625_v0 = vld [vmem:[%s3357_s4 + $0xe0] sm:$0xff] }
 0x46a   : > { %v1035_v59 = vpop.f32.mrf.mxu3  ;;  %v1048_v60 = vsel %vm354_vm0, %v3046_v58, 0.0 }
 0x46b   : > { %1049 = vadd.xlane.f32.xlu1 %v1048_v60  ;;  %v2622_v59 = vld [vmem:[%s3357_s4 + $0xc8] sm:$0xff] }
 0x46c   : > { %v2614_v60 = vld [vmem:[%s3357_s4 + $0x88] sm:$0xff] }
 0x46d   : > { %1111 = vmatpush.bf16.msra.mxu0 %v2589_v6 }
 0x471   : > { %1295 = vmatpush.bf16.msrb.mxu0 %v2600_v11 }
 0x475   : > { %1296 = vmatpush.bf16.msrb.mxu0 %v2599_v17 }
 0x479   : > { %1297 = vmatpush.bf16.msrb.mxu0 %v2598_v22 }
 0x47d   : > { %1298 = vmatpush.bf16.msrb.mxu0 %v2597_v26 }
 0x4de   : > { %v1050_v61 = vpop.xlane.xlu1 %1049 }
 0x4df   : > { %v1051_v62 = vmul.f32 %v1050_v61, %v2898_v8  ;;  %v2618_v61 = vld [vmem:[%s3357_s4 + $0xa8] sm:$0xff] }
 0x4e1   : > { %v3052_v63 = vsub.f32 %v3046_v58, %v1051_v62  ;;  %v2626_v62 = vld [vmem:[%s3357_s4 + $0xe8] sm:$0xff] }
 0x4e3   : > { %v1053_v1 = vmul.f32 %v3052_v63, %v3052_v63 }
 0x4e5   : > { %v1054_v2 = vsel %vm354_vm0, %v1053_v1, 0.0  ;;  %v2613_v1 = vld [vmem:[%s3357_s4 + $0x80] sm:$0xff] }
 0x4e6   : > { %1055 = vadd.xlane.f32.xlu2 %v1054_v2  ;;  %v2617_v2 = vld [vmem:[%s3357_s4 + $0xa0] sm:$0xff] }
 0x559   : > { %v1056_v14 = vpop.xlane.xlu2 %1055 }
 0x55a   : > { %v1057_v16 = vmul.f32 %v1056_v14, %v2898_v8 }
 0x55c   : > { %v1058_v21 = vadd.f32 1e-05, %v1057_v16 }
 0x55e   : > { %2701 = vrsqrt.f32 %v1058_v21  ;;  %vm1065_vm8 = vweird.f32 %v1058_v21 }
 0x564   : > { %v2702_v30 = vpop.eup %2701 }
 0x565   : > { %v1060_v31 = vmul.f32 %v2702_v30, %v1058_v21  ;;  %vm1066_vm7 = vweird.f32 %v2702_v30 }
 0x566   : > { %vm1067_vm9 = vmor %vm1065_vm8, %vm1066_vm7 }
 0x567   : > { %v1061_v32 = vmul.f32 %v2702_v30, %v1060_v31 }
 0x569   : > { %v1062_v33 = vmul.f32 0.5, %v1061_v32 }
 0x56b   : > { %v1063_v34 = vsub.f32 1.5, %v1062_v33 }
 0x56d   : > { %v1064_v35 = vmul.f32 %v2702_v30, %v1063_v34 }
 0x56f   : > { %v1068_v37 = vsel %vm1067_vm9, %v2702_v30, %v1064_v35 }
 0x570   : > { %v1069_v38 = vmul.f32 %v1068_v37, %v3052_v63  ;;  %v2621_v63 = vld [vmem:[%s3357_s4 + $0xc0] sm:$0xff] }
 0x572   : > { %v1070_v40 = vmul.f32 %v1069_v38, %v1046_v36 }
 0x574   : > { %v1071_v41 = vadd.f32 %v1070_v40, %v1047_v39 }
 0x576   : > { %v1088_v42 = vpack.c.bf16 %v1071_v41, %v1071_v41 }
 0x578   : > { %2329 = vmatmul.msk.bf16.vlgmr.msra.gmra.mxu0 %vm354_vm0, %v1088_v42  ;;  %2338 = vmatmul.msk.bf16.vlgmr.msra.gmra.mxu1 %vm354_vm0, %v1088_v42 }
 0x579   : > { %2347 = vmatmul.msk.bf16.vlgmr.msrb.gmra.mxu2 %vm354_vm0, %v1088_v42  ;;  %2356 = vmatmul.msk.bf16.vlgmr.msrb.gmra.mxu3 %vm354_vm0, %v1088_v42 }
 0x57a   : > { %1523 = vmatpush.bf16.msrb.mxu2 %v2624_v50  ;;  %1447 = vmatpush.bf16.msra.mxu0 %v2616_v51 }
 0x57b   : > { %1485 = vmatpush.bf16.msra.mxu1 %v2620_v52  ;;  %1561 = vmatpush.bf16.msrb.mxu3 %v2628_v53 }
 0x57e   : > { %1524 = vmatpush.bf16.msrb.mxu2 %v2623_v56  ;;  %1448 = vmatpush.bf16.msra.mxu0 %v2615_v54 }
 0x57f   : > { %1486 = vmatpush.bf16.msra.mxu1 %v2619_v55  ;;  %1562 = vmatpush.bf16.msrb.mxu3 %v2627_v57 }
 0x582   : > { %1525 = vmatpush.bf16.msrb.mxu2 %v2622_v59  ;;  %1449 = vmatpush.bf16.msra.mxu0 %v2614_v60 }
 0x583   : > { %1487 = vmatpush.bf16.msra.mxu1 %v2618_v61  ;;  %1563 = vmatpush.bf16.msrb.mxu3 %v2626_v62 }
 0x586   : > { %1526 = vmatpush.bf16.msrb.mxu2 %v2621_v63  ;;  %1450 = vmatpush.bf16.msra.mxu0 %v2613_v1 }
 0x587   : > { %1488 = vmatpush.bf16.msra.mxu1 %v2617_v2  ;;  %1564 = vmatpush.bf16.msrb.mxu3 %v2625_v0 }
 0x588   : > { %2373 = vmatmul.msk.bf16.vlgmr.msrb.gmra.mxu0 %vm1287_vm10, %v1262_v49  ;;  %2390 = vmatmul.msk.bf16.vlgmr.msrb.gmra.mxu1 %vm1287_vm10, %v1262_v49 }
 0x589   : > { %2407 = vmatmul.msk.bf16.vlgmr.msra.gmra.mxu2 %vm1287_vm10, %v1262_v49  ;;  %2424 = vmatmul.msk.bf16.vlgmr.msra.gmra.mxu3 %vm1287_vm10, %v1262_v49 }
 0x598   : > { %2441 = vmatmul.msk.bf16.vlgmr.msra.gmra.mxu0 %vm1287_vm10, %v1262_v49  ;;  %2458 = vmatmul.msk.bf16.vlgmr.msra.gmra.mxu1 %vm1287_vm10, %v1262_v49 }
 0x599   : > { %2475 = vmatmul.msk.bf16.vlgmr.msrb.gmra.mxu2 %vm1287_vm10, %v1262_v49  ;;  %2492 = vmatmul.msk.bf16.vlgmr.msrb.gmra.mxu3 %vm1287_vm10, %v1262_v49 }
 0x5f5   : > { %v1113_v3 = vpop.f32.mrf.mxu0  ;;  %v1138_v4 = vpop.f32.mrf.mxu1 }
 0x5f6   : > { %v1577_v42 = vpack.c.bf16 %v1113_v3, %v1113_v3  ;;  %v1578_v43 = vpack.c.bf16 %v1138_v4, %v1138_v4 }
 0x5fc   : > { %v1163_v5 = vpop.f32.mrf.mxu2  ;;  %v1188_v6 = vpop.f32.mrf.mxu3 }
 0x5fd   : > { %v1115_v7 = vpop.f32.mrf.mxu0  ;;  %v1140_v9 = vpop.f32.mrf.mxu1  ;;  %v1579_v46 = vpack.c.bf16 %v1163_v5, %v1163_v5  ;;  %v1580_v47 = vpack.c.bf16 %v1188_v6, %v1188_v6 }
 0x604   : > { %v1165_v10 = vpop.f32.mrf.mxu2  ;;  %v1190_v11 = vpop.f32.mrf.mxu3 }
 0x605   : > { %v1300_v12 = vpop.f32.mrf.mxu0  ;;  %v1338_v13 = vpop.f32.mrf.mxu1 }
 0x606   : > { %v1581_v14 = vpack.c.bf16 %v1300_v12, %v1300_v12  ;;  %v1583_v15 = vpack.c.bf16 %v1338_v13, %v1338_v13 }
 0x608   : > { %v1591_v20 = vunpack.c.l.b16 %v1581_v14  ;;  %v1615_v21 = vunpack.c.l.b16 %v1583_v15 }
 0x60c   : > { %v1376_v16 = vpop.f32.mrf.mxu2  ;;  %v1414_v17 = vpop.f32.mrf.mxu3 }
 0x60d   : > { %v1302_v18 = vpop.f32.mrf.mxu0  ;;  %v1340_v19 = vpop.f32.mrf.mxu1  ;;  %v1585_v28 = vpack.c.bf16 %v1376_v16, %v1376_v16  ;;  %v1587_v29 = vpack.c.bf16 %v1414_v17, %v1414_v17 }
 0x60e   : > { %v1582_v22 = vpack.c.bf16 %v1302_v18, %v1302_v18  ;;  %v1584_v23 = vpack.c.bf16 %v1340_v19, %v1340_v19 }
 0x60f   : > { %v1639_v36 = vunpack.c.l.b16 %v1585_v28  ;;  %v1663_v37 = vunpack.c.l.b16 %v1587_v29 }
 0x610   : > { %v1592_v24 = vunpack.c.l.b16 %v1582_v22  ;;  %v1616_v25 = vunpack.c.l.b16 %v1584_v23 }
 0x612   : > { %v1593_v26 = vpack.c.b16 %v1592_v24, %v1591_v20  ;;  %v1617_v27 = vpack.c.b16 %v1616_v25, %v1615_v21 }
 0x614   : > { %v1378_v30 = vpop.f32.mrf.mxu2  ;;  %v1416_v31 = vpop.f32.mrf.mxu3  ;;  %v1598_v32 = vsel %vm751_vm5, %v1593_v26, 0  ;;  %v1622_v33 = vsel %vm751_vm5, %v1617_v27, 0 }
 0x615   : > { %v1586_v34 = vpack.c.bf16 %v1378_v30, %v1378_v30  ;;  %v1588_v35 = vpack.c.bf16 %v1416_v31, %v1416_v31  ;;  %1607 = vmatpush.bf16.xpose.msrb.mxu0 %v1598_v32  ;;  %1631 = vmatpush.bf16.xpose.msrb.mxu1 %v1622_v33  ;;  %v1452_v49 = vpop.f32.mrf.mxu0  ;;  %v1490_v50 = vpop.f32.mrf.mxu1 }
 0x616   : > { %v1734_v60 = vpack.c.bf16 %v1452_v49, %v1452_v49  ;;  %v1736_v2 = vpack.c.bf16 %v1490_v50, %v1490_v50 }
 0x617   : > { %v1640_v38 = vunpack.c.l.b16 %v1586_v34  ;;  %v1664_v39 = vunpack.c.l.b16 %v1588_v35 }
 0x618   : > { %v1744_v9 = vunpack.c.l.b16 %v1734_v60  ;;  %v1769_v10 = vunpack.c.l.b16 %v1736_v2 }
 0x619   : > { %v1641_v40 = vpack.c.b16 %v1640_v38, %v1639_v36  ;;  %v1665_v41 = vpack.c.b16 %v1664_v39, %v1663_v37 }
 0x61b   : > { %v1646_v44 = vsel %vm751_vm5, %v1641_v40, 0  ;;  %v1670_v45 = vsel %vm751_vm5, %v1665_v41, 0 }
 0x61c   : > { %1655 = vmatpush.bf16.xpose.msra.mxu2 %v1646_v44  ;;  %1679 = vmatpush.bf16.xpose.msra.mxu3 %v1670_v45  ;;  %v1528_v48 = vpop.f32.mrf.mxu2  ;;  %v1566_v51 = vpop.f32.mrf.mxu3 }
 0x61d   : > { %2497 = vmatmul.msk.bf16.vlgmr.msrb.gmra.mxu0 %vm751_vm5, %v1577_v42  ;;  %2498 = vmatmul.msk.bf16.vlgmr.msrb.gmra.mxu1 %vm751_vm5, %v1578_v43  ;;  %v1738_v52 = vpack.c.bf16 %v1528_v48, %v1528_v48  ;;  %v1740_v53 = vpack.c.bf16 %v1566_v51, %v1566_v51  ;;  %v1454_v61 = vpop.f32.mrf.mxu0  ;;  %v1492_v62 = vpop.f32.mrf.mxu1 }
 0x61e   : > { %v1735_v0 = vpack.c.bf16 %v1454_v61, %v1454_v61  ;;  %v1737_v3 = vpack.c.bf16 %v1492_v62, %v1492_v62 }
 0x61f   : > { %v1793_v55 = vunpack.c.l.b16 %v1738_v52  ;;  %v1817_v63 = vunpack.c.l.b16 %v1740_v53 }
 0x620   : > { %v1745_v11 = vunpack.c.l.b16 %v1735_v0  ;;  %v1770_v12 = vunpack.c.l.b16 %v1737_v3  ;;  %v2493_v3 = vld [vmem:[%s3358_s5 + $0x10] sm:$0xf] }
 0x622   : > { %v1746_v14 = vpack.c.b16 %v1745_v11, %v1744_v9  ;;  %v1771_v15 = vpack.c.b16 %v1770_v12, %v1769_v10  ;;  %v2494_v10 = vld [vmem:[%s3358_s5 + $0x14] sm:$0xf] }
 0x623   : > { %2499 = vmatmul.msk.bf16.vlgmr.msra.gmra.mxu2 %vm751_vm5, %v1579_v46  ;;  %2500 = vmatmul.msk.bf16.vlgmr.msra.gmra.mxu3 %vm751_vm5, %v1580_v47  ;;  %v1866_v11 = vsel %vm883_vm6, %v2494_v10, 0 }
 0x624   : > { %v1530_v54 = vpop.f32.mrf.mxu2  ;;  %v1568_v59 = vpop.f32.mrf.mxu3  ;;  %v1752_v16 = vsel %vm1750_vm11, %v1746_v14, 0  ;;  %v1776_v17 = vsel %vm1750_vm11, %v1771_v15, 0 }
 0x625   : > { %v1739_v56 = vpack.c.bf16 %v1530_v54, %v1530_v54  ;;  %v1741_v1 = vpack.c.bf16 %v1568_v59, %v1568_v59  ;;  %1761 = vmatpush.bf16.msra.mxu0 %v1752_v16  ;;  %1785 = vmatpush.bf16.msra.mxu1 %v1776_v17 }
 0x627   : > { %v1794_v57 = vunpack.c.l.b16 %v1739_v56  ;;  %v1818_v5 = vunpack.c.l.b16 %v1741_v1 }
 0x629   : > { %v1795_v4 = vpack.c.b16 %v1794_v57, %v1793_v55  ;;  %v1819_v7 = vpack.c.b16 %v1818_v5, %v1817_v63  ;;  %v2495_v5 = vld [vmem:[%s3358_s5 + $0x18] sm:$0xf]  ;;  %1875 = vmatpush.bf16.msrb.mxu1 %v1866_v11 }
 0x62b   : > { %v1800_v6 = vsel %vm1750_vm11, %v1795_v4, 0  ;;  %v1824_v13 = vsel %vm1750_vm11, %v1819_v7, 0  ;;  %v1847_v4 = vsel %vm883_vm6, %v2493_v3, 0  ;;  %v1885_v7 = vsel %vm883_vm6, %v2495_v5, 0 }
 0x62c   : > { %1809 = vmatpush.bf16.msrb.mxu2 %v1800_v6  ;;  %1833 = vmatpush.bf16.msrb.mxu3 %v1824_v13  ;;  %v2496_v6 = vld [vmem:[%s3358_s5 + $0x1c] sm:$0xf] }
 0x62d   : > { %1856 = vmatpush.bf16.msrb.mxu0 %v1847_v4  ;;  %v1904_v9 = vsel %vm883_vm6, %v2496_v6, 0  ;;  %v1928_v6 = vld [vmem:[%s3361_s8 + $0x6] ss:$0 sm:$0xff] }
 0x630   : > { %1894 = vmatpush.bf16.msra.mxu2 %v1885_v7  ;;  %1913 = vmatpush.bf16.msra.mxu3 %v1904_v9 }
 0x69a   : > { %v1609_v18 = vpop.f32.mrf.mxu0  ;;  %v1633_v19 = vpop.f32.mrf.mxu1 }
 0x69b   : > { %v1686_v20 = vsel %vm1685_vm12, %v1609_v18, -inf  ;;  %v1689_v29 = vsel %vm1685_vm12, %v1633_v19, -inf }
 0x69c   : > { %1687 = vmax.xlane.f32.xlu2 %v1686_v20 }
 0x6a2   : > { %v1611_v21 = vpop.f32.mrf.mxu0  ;;  %v1635_v22 = vpop.f32.mrf.mxu1 }
 0x6a6   : > { %v1657_v23 = vpop.f32.mrf.mxu2  ;;  %v1681_v24 = vpop.f32.mrf.mxu3 }
 0x6a7   : > { %v1695_v25 = vsel %vm1685_vm12, %v1681_v24, -inf  ;;  %v1692_v26 = vsel %vm1685_vm12, %v1657_v23, -inf }
 0x6a8   : > { %1696 = vmax.xlane.f32.xlu1 %v1695_v25  ;;  %1693 = vmax.xlane.f32.xlu0 %v1692_v26 }
 0x6ae   : > { %v1659_v27 = vpop.f32.mrf.mxu2  ;;  %v1683_v28 = vpop.f32.mrf.mxu3 }
 0x6b0   : > { %1690 = vmax.xlane.f32.xlu0 %v1689_v29 }
 0x70f   : > { %v1688_v30 = vpop.xlane.xlu2 %1687 }
 0x710   : > { %v1698_v31 = vsub.f32 %v1609_v18, %v1688_v30 }
 0x712   : > { %v1702_v32 = vmul.f32 1.442695, %v1698_v31 }
 0x714   : > { %2703 = vpow2.f32 %v1702_v32 }
 0x71a   : > { %v2704_v33 = vpop.eup %2703 }
 0x71b   : > { %v1697_v34 = vpop.xlane.xlu1 %1696  ;;  %v1694_v35 = vpop.xlane.xlu0 %1693  ;;  %v1710_v36 = vsel %vm1685_vm12, %v2704_v33, 0.0 }
 0x71c   : > { %v1701_v37 = vsub.f32 %v1681_v24, %v1697_v34  ;;  %v1700_v38 = vsub.f32 %v1657_v23, %v1694_v35  ;;  %1711 = vadd.xlane.f32.xlu0 %v1710_v36  ;;  %v1576_v34 = vld [vmem:[%s3361_s8 + $0x5] ss:$0 sm:$0xff] }
 0x71e   : > { %v1708_v39 = vmul.f32 1.442695, %v1701_v37  ;;  %v1706_v40 = vmul.f32 1.442695, %v1700_v38 }
 0x720   : > { %2705 = vpow2.f32 %v1708_v39 }
 0x721   : > { %2707 = vpow2.f32 %v1706_v40 }
 0x723   : > { %v1691_v41 = vpop.xlane.xlu0 %1690 }
 0x724   : > { %v1699_v42 = vsub.f32 %v1633_v19, %v1691_v41 }
 0x726   : > { %v2706_v43 = vpop.eup %2705  ;;  %v1704_v44 = vmul.f32 1.442695, %v1699_v42 }
 0x727   : > { %v2708_v45 = vpop.eup %2707  ;;  %v1719_v46 = vsel %vm1685_vm12, %v2706_v43, 0.0 }
 0x728   : > { %2709 = vpow2.f32 %v1704_v44  ;;  %v1716_v47 = vsel %vm1685_vm12, %v2708_v45, 0.0  ;;  %1720 = vadd.xlane.f32.xlu2 %v1719_v46 }
 0x729   : > { %1717 = vadd.xlane.f32.xlu1 %v1716_v47 }
 0x72e   : > { %v2710_v48 = vpop.eup %2709 }
 0x72f   : > { %v1713_v49 = vsel %vm1685_vm12, %v2710_v48, 0.0 }
 0x731   : > { %1714 = vadd.xlane.f32.xlu1 %v1713_v49  ;;  %v2631_v49 = vld [vmem:[%s3359_s6 + $0x14] sm:$0xf] }
 0x78f   : > { %v1712_v50 = vpop.xlane.xlu0 %1711 }
 0x790   : > { %2711 = vrcp.f32 %v1712_v50 }
 0x796   : > { %v2712_v51 = vpop.eup %2711 }
 0x797   : > { %v1726_v52 = vmul.f32 %v2712_v51, %v2704_v33  ;;  %v2522_v51 = vld [vmem:[%s3359_s6 + $0x18] sm:$0xf0] }
 0x799   : > { %v1730_v53 = vpack.c.bf16 %v1726_v52, %v1726_v52  ;;  %v2525_v52 = vor.u32 %v2631_v49, %v2522_v51 }
 0x79b   : > { %2501 = vmatmul.msk.bf16.vlgmr.msra.gmra.mxu0 %vm1685_vm12, %v1730_v53  ;;  %v1721_v54 = vpop.xlane.xlu2 %1720  ;;  %v2512_v53 = vld [vmem:[%s3359_s6] sm:$0xf] }
 0x79c   : > { %v1718_v55 = vpop.xlane.xlu1 %1717  ;;  %2713 = vrcp.f32 %v1721_v54  ;;  %v2630_v54 = vld [vmem:[%s3359_s6 + $0x4] sm:$0xf0] }
 0x79d   : > { %2715 = vrcp.f32 %v1718_v55  ;;  %v2629_v55 = vld [vmem:[%s3359_s6 + $0x4] sm:$0xf] }
 0x7a2   : > { %v2714_v56 = vpop.eup %2713 }
 0x7a3   : > { %v2716_v57 = vpop.eup %2715  ;;  %v1729_v59 = vmul.f32 %v2714_v56, %v2706_v43  ;;  %v2513_v56 = vor.u32 %v2630_v54, %v2512_v53 }
 0x7a4   : > { %v1728_v60 = vmul.f32 %v2716_v57, %v2708_v45  ;;  %v1715_v61 = vpop.xlane.xlu1 %1714  ;;  %v2514_v57 = vld [vmem:[%s3359_s6 + $0x8] sm:$0xf0] }
 0x7a5   : > { %v1733_v62 = vpack.c.bf16 %v1729_v59, %v1729_v59  ;;  %2717 = vrcp.f32 %v1715_v61  ;;  %v2517_v59 = vor.u32 %v2629_v55, %v2514_v57 }
 0x7a6   : > { %v1732_v63 = vpack.c.bf16 %v1728_v60, %v1728_v60  ;;  %v2640_v60 = vld [vmem:[%s3360_s7 + $0x38] sm:$0xff] }
 0x7a7   : > { %2504 = vmatmul.msk.bf16.vlgmr.msrb.gmra.mxu3 %vm1685_vm12, %v1733_v62 }
 0x7a8   : > { %2503 = vmatmul.msk.bf16.vlgmr.msrb.gmra.mxu2 %vm1685_vm12, %v1732_v63 }
 0x7a9   : > { %2091 = vmatpush.bf16.msrb.mxu2 %v2640_v60 }
 0x7ab   : > { %v2718_v1 = vpop.eup %2717 }
 0x7ac   : > { %v1727_v2 = vmul.f32 %v2718_v1, %v2710_v48  ;;  %v2520_v48 = vld [vmem:[%s3359_s6 + $0x10] sm:$0xf] }
 0x7ae   : > { %v1731_v0 = vpack.c.bf16 %v1727_v2, %v1727_v2 }
 0x7b0   : > { %2502 = vmatmul.msk.bf16.vlgmr.msra.gmra.mxu1 %vm1685_vm12, %v1731_v0 }
 0x7b1   : > { %2008 = vmatpush.bf16.msra.mxu1 %v2525_v52 }
 0x7b5   : > { %2009 = vmatpush.bf16.msra.mxu1 %v2517_v59 }
 0x818   : > { %v1763_v12 = vpop.f32.mrf.mxu0 }
 0x819   : > { %v1839_v13 = vpack.c.bf16 %v1763_v12, %v1763_v12 }
 0x81b   : > { %2505 = vmatmul.msk.bf16.vlgmr.msrb.gmra.mxu0 %vm751_vm5, %v1839_v13  ;;  %v2639_v13 = vld [vmem:[%s3360_s7 + $0x30] sm:$0xff] }
 0x81c   : > { %2092 = vmatpush.bf16.msrb.mxu2 %v2639_v13 }
 0x820   : > { %v1765_v14 = vpop.f32.mrf.mxu0 }
 0x821   : > { %v2638_v14 = vld [vmem:[%s3360_s7 + $0x28] sm:$0xff] }
 0x822   : > { %2093 = vmatpush.bf16.msrb.mxu2 %v2638_v14 }
 0x82a   : > { %v1835_v15 = vpop.f32.mrf.mxu3 }
 0x82b   : > { %v1811_v16 = vpop.f32.mrf.mxu2  ;;  %v1842_v17 = vpack.c.bf16 %v1835_v15, %v1835_v15  ;;  %v2637_v15 = vld [vmem:[%s3360_s7 + $0x20] sm:$0xff] }
 0x82c   : > { %v1841_v18 = vpack.c.bf16 %v1811_v16, %v1811_v16  ;;  %2094 = vmatpush.bf16.msrb.mxu2 %v2637_v15  ;;  %v2636_v16 = vld [vmem:[%s3360_s7 + $0x18] sm:$0xff] }
 0x82d   : > { %v1787_v19 = vpop.f32.mrf.mxu1  ;;  %2508 = vmatmul.msk.bf16.vlgmr.msra.gmra.mxu3 %vm751_vm5, %v1842_v17  ;;  %v2635_v17 = vld [vmem:[%s3360_s7 + $0x10] sm:$0xff] }
 0x82e   : > { %v1840_v20 = vpack.c.bf16 %v1787_v19, %v1787_v19  ;;  %2507 = vmatmul.msk.bf16.vlgmr.msra.gmra.mxu2 %vm751_vm5, %v1841_v18  ;;  %v2634_v18 = vld [vmem:[%s3360_s7 + $0x8] sm:$0xff]  ;;  %v2633_v19 = vld [vmem:[%s3360_s7] sm:$0xff] }
 0x830   : > { %2506 = vmatmul.msk.bf16.vlgmr.msrb.gmra.mxu1 %vm751_vm5, %v1840_v20  ;;  %2095 = vmatpush.bf16.msrb.mxu2 %v2636_v16  ;;  %v2509_v20 = vld [vmem:[%s3361_s8 + $0x11] ss:$8 sm:$0x3] }
 0x832   : > { %v1837_v21 = vpop.f32.mrf.mxu3 }
 0x833   : > { %v1813_v22 = vpop.f32.mrf.mxu2  ;;  %v1963_v21 = vperm.slane %v2509_v20, 1 }
 0x834   : > { %2096 = vmatpush.bf16.msrb.mxu2 %v2635_v17 }
 0x835   : > { %v1789_v23 = vpop.f32.mrf.mxu1 }
 0x838   : > { %2097 = vmatpush.bf16.msrb.mxu2 %v2634_v18 }
 0x83c   : > { %2098 = vmatpush.bf16.msrb.mxu2 %v2633_v19 }
 0x898   : > { %v1858_v24 = vpop.f32.mrf.mxu0 }
 0x899   : > { %v1919_v28 = vsel %vm354_vm0, %v1858_v24, 0.0 }
 0x8a0   : > { %v1860_v25 = vpop.f32.mrf.mxu0 }
 0x8ad   : > { %v1877_v26 = vpop.f32.mrf.mxu1 }
 0x8ae   : > { %v1920_v27 = vsel %vm354_vm0, %v1877_v26, 0.0 }
 0x8af   : > { %v1921_v30 = vadd.f32 %v1920_v27, %v1919_v28 }
 0x8b0   : > { %v1915_v29 = vpop.f32.mrf.mxu3 }
 0x8b1   : > { %v1896_v31 = vpop.f32.mrf.mxu2  ;;  %v1924_v35 = vsel %vm354_vm0, %v1915_v29, 0.0 }
 0x8b2   : > { %v1922_v32 = vsel %vm354_vm0, %v1896_v31, 0.0 }
 0x8b3   : > { %v1923_v33 = vadd.f32 %v1922_v32, %v1921_v30 }
 0x8b5   : > { %v1925_v36 = vadd.f32 %v1924_v35, %v1923_v33  ;;  %v1879_v37 = vpop.f32.mrf.mxu1  ;;  %v1962_v33 = vperm.slane %v2509_v20, 0 }
 0x8b7   : > { %v1926_v38 = vadd.f32 %v1925_v36, %v1576_v34 }
 0x8b8   : > { %v1917_v39 = vpop.f32.mrf.mxu3 }
 0x8b9   : > { %v1898_v40 = vpop.f32.mrf.mxu2  ;;  %v3249_v41 = vadd.f32 %v1926_v38, %v3046_v58  ;;  %v2632_v58 = vld [vmem:[%s3359_s6 + $0x14] sm:$0xf0] }
 0x8ba   : > { %v2521_v50 = vor.u32 %v2632_v58, %v2520_v48  ;;  %v2042_v40 = vld [vmem:[%s3361_s8 + $0x10] ss:$0 sm:$0xff] }
 0x8bb   : > { %v1930_v42 = vsel %vm354_vm0, %v3249_v41, 0.0 }
 0x8bc   : > { %1931 = vadd.xlane.f32.xlu2 %v1930_v42  ;;  %1995 = vmatpush.bf16.msra.mxu0 %v2521_v50 }
 0x8c0   : > { %1996 = vmatpush.bf16.msra.mxu0 %v2513_v56 }
 0x92f   : > { %v1932_v43 = vpop.xlane.xlu2 %1931 }
 0x930   : > { %v1933_v44 = vmul.f32 %v1932_v43, %v2898_v8 }
 0x932   : > { %v1934_v45 = vsub.f32 %v3249_v41, %v1933_v44 }
 0x934   : > { %v1935_v46 = vmul.f32 %v1934_v45, %v1934_v45 }
 0x936   : > { %v1936_v47 = vsel %vm354_vm0, %v1935_v46, 0.0 }
 0x937   : > { %1937 = vadd.xlane.f32.xlu0 %v1936_v47 }
 0x9aa   : > { %v1938_v61 = vpop.xlane.xlu0 %1937 }
 0x9ab   : > { %v1939_v62 = vmul.f32 %v1938_v61, %v2898_v8  ;;  %v1929_v8 = vld [vmem:[%s3361_s8 + $0x7] ss:$0 sm:$0xff] }
 0x9ad   : > { %v1940_v63 = vadd.f32 1e-05, %v1939_v62 }
 0x9af   : > { %2719 = vrsqrt.f32 %v1940_v63  ;;  %vm1947_vm14 = vweird.f32 %v1940_v63 }
 0x9b5   : > { %v2720_v1 = vpop.eup %2719 }
 0x9b6   : > { %v1942_v2 = vmul.f32 %v2720_v1, %v1940_v63  ;;  %vm1948_vm13 = vweird.f32 %v2720_v1 }
 0x9b7   : > { %vm1949_vm15 = vmor %vm1947_vm14, %vm1948_vm13 }
 0x9b8   : > { %v1943_v0 = vmul.f32 %v2720_v1, %v1942_v2 }
 0x9ba   : > { %v1944_v3 = vmul.f32 0.5, %v1943_v0 }
 0x9bc   : > { %v1945_v4 = vsub.f32 1.5, %v1944_v3 }
 0x9be   : > { %v1946_v5 = vmul.f32 %v2720_v1, %v1945_v4 }
 0x9c0   : > { %v1950_v7 = vsel %vm1949_vm15, %v2720_v1, %v1946_v5 }
 0x9c1   : > { %v1951_v9 = vmul.f32 %v1950_v7, %v1934_v45 }
 0x9c3   : > { %v1952_v10 = vmul.f32 %v1951_v9, %v1928_v6 }
 0x9c5   : > { %v1953_v11 = vadd.f32 %v1952_v10, %v1929_v8 }
 0x9c7   : > { %v1954_v12 = vpack.c.bf16 %v1953_v11, %v1953_v11 }
 0x9c9   : > { %2526 = vmatmul.msk.bf16.vlgmr.msra.gmra.mxu0 %vm354_vm0, %v1954_v12  ;;  %2527 = vmatmul.msk.bf16.vlgmr.msra.gmra.mxu1 %vm354_vm0, %v1954_v12 }
 0xa46   : > { %v1998_v22 = vpop.f32.mrf.mxu0  ;;  %v2011_v23 = vpop.f32.mrf.mxu1 }
 0xa47   : > { %v2012_v24 = vadd.f32 %v2011_v23, %v1963_v21  ;;  %v1999_v36 = vadd.f32 %v1998_v22, %v1962_v33 }
 0xa49   : > { %v2015_v25 = vmul.f32 %v2012_v24, %v2012_v24 }
 0xa4b   : > { %v2016_v26 = vmul.f32 %v2015_v25, %v2012_v24 }
 0xa4d   : > { %v2017_v27 = vmul.f32 0.044715, %v2016_v26 }
 0xa4e   : > { %v2000_v28 = vpop.f32.mrf.mxu0  ;;  %v2013_v29 = vpop.f32.mrf.mxu1 }
 0xa4f   : > { %v2018_v30 = vadd.f32 %v2017_v27, %v2012_v24 }
 0xa51   : > { %v2019_v31 = vmul.f32 0.7978846, %v2018_v30 }
 0xa53   : > { %2721 = vtanh.f32 %v2019_v31 }
 0xa59   : > { %v2722_v32 = vpop.eup %2721 }
 0xa5a   : > { %v2021_v34 = vadd.f32 1.0, %v2722_v32 }
 0xa5c   : > { %v2022_v35 = vmul.f32 0.5, %v2021_v34 }
 0xa5e   : > { %v2023_v37 = vmul.f32 %v2022_v35, %v2012_v24 }
 0xa60   : > { %v2024_v38 = vmul.f32 %v2023_v37, %v1999_v36 }
 0xa62   : > { %v2025_v39 = vpack.c.bf16 %v2024_v38, %v2024_v38 }
 0xa64   : > { %2099 = vmatmul.bf16.vlgmr.msrb.gmra.mxu2 %v2025_v39 }
 0xae7   : > { %v2100_v42 = vpop.f32.mrf.mxu2 }
 0xae8   : > { %v2101_v43 = vadd.f32 %v2100_v42, %v2042_v40 }
 0xaea   : > { %v2104_v44 = vadd.f32 %v2101_v43, %v3249_v41 }
 0xaec   : > { %2105 = vst.msk [vmem:[%s338_s26] sm:$0xff] %vm354_vm0, %v2104_v44 }
 0xaed   : > { %2750 = shalt.err (!%p2747_p3)
}
 0xaee   : > { %2641 = dma.vmem_to_hbm [thread:$0]  (%p2876_p5), %s2120_s27, 128, %s2122_s28, %s2107_s13  }
 0xaef   : > { %v2102_v41 = vpop.f32.mrf.mxu2 }
 0xaf0 PF: > { %p2647_p4 = scmp.ge.s32.totalorder %s2785_s12, 2  ;;  %s2133_s14 = sand.u32 1, %s2773_s30  }
 0xaf1   : > { %s2134_s25 = scalar_lea.sflag [#allocation3], %s2133_s14 }
 0xaf2   : > { %p2644_p7 = pnand %p2647_p4, %p2880_p6 }
 0xaf4   : > { %p2645_p8 = pneg %p2644_p7 }
 0xaf6   : > { %2768 = dma.done.wait (%p2645_p8), %s2134_s25, 128  }
 0xaf7   : > { %2770 = vsyncadd (%p2645_p8), %s2134_s25, 4294967168  ;;  %p19_p9 = scmp.ge.s32.totalorder %s2863_s15, 4   ;;  %s3365_s30 = smov %s2777_s10 }
 0xaf8   : > { %s3366_s10 = smov %s2781_s11  ;;  %s3367_s11 = smov %s2874_s18 }
 0xaf9   : > { %s3368_s12 = smov %s2863_s15  ;;  %21 = sbr.rel (!%p19_p9) target bundleno = 3 (0x3), region = 96 }
 0xafe   :  { %2140 = vsyncpa [#allocation3], 1 }
 0xaff   :  { %2142 = vsyncpa [#allocation3 + $0x1], 1 }

</bundles_post_ra>
